<compile_context>
chip_gen: v7x
topology: tpu7x:2x2x1
jax: 0.10.0
libtpu: 0.0.40
codegen_flags: <defaults>
</compile_context>

<pallas_src>
import functools
import math

import jax
import jax.numpy as jnp
import numpy as np
from jax.experimental import pallas as pl
from jax.experimental.pallas import tpu as pltpu


def _round_up(x, m):
    return ((x + m - 1) // m) * m


def _cdiv(a, b):
    return (a + b - 1) // b


# ----------------------------------------------------------------------------
# Fused kernel: Q/K/V projections + per-frame softmax attention + out_proj.
# One grid step = one block of `Vb` videos; all intermediates stay in VMEM.
# ----------------------------------------------------------------------------
def _fused_mha_kernel(cls_ref, x_ref, wqt_ref, bq_ref, wkt_ref, bk_ref,
                      wvt_ref, bv_ref, wot_ref, bo_ref, o_ref, attn_ref,
                      *, num_heads, head_dim):
    vb, f, e = x_ref.shape
    t = cls_ref.shape[0]
    ep = o_ref.shape[-1]

    # Q projection (1/sqrt(Dh) pre-folded into wq/bq).  Tiny; recomputed per
    # grid step so q never leaves VMEM and no extra kernel launch is needed.
    q = (jnp.dot(cls_ref[...], wqt_ref[...],
                 preferred_element_type=jnp.float32)
         + bq_ref[...]).astype(jnp.bfloat16)                         # (T, E)

    # K/V projections for the whole video block (leading-dim reshape is free).
    x = x_ref[...].reshape(vb * f, e)                                # bf16
    k = (jnp.dot(x, wkt_ref[...], preferred_element_type=jnp.float32)
         + bk_ref[...]).astype(jnp.bfloat16)                         # (Vb*F, E)
    v = (jnp.dot(x, wvt_ref[...], preferred_element_type=jnp.float32)
         + bv_ref[...]).astype(jnp.bfloat16)                         # (Vb*F, E)

    # Per-head attention.  Static loop (== unrolled fori_loop); each head's
    # (Vb, T, Dh) result is written straight into the persistent bf16 VMEM
    # slab `attn_ref` at lane offset h*Dh, so only one accumulator is live at
    # a time and there is no lane-narrow concatenate at the end.
    for h in range(num_heads):
        lo = h * head_dim
        kh = k[:, lo:lo + head_dim]                                  # (Vb*F, Dh)
        qh = q[:, lo:lo + head_dim]                                  # (T, Dh)
        vh = v[:, lo:lo + head_dim].reshape(vb, f, head_dim)         # (Vb, F, Dh)

        # logits[(b,f), t] = sum_d kh * qh   (scale already folded into q)
        logits = jax.lax.dot_general(
            kh, qh, (((1,), (1,)), ((), ())),
            preferred_element_type=jnp.float32).reshape(vb, f, t)

        # Softmax over frames (axis 1), f32; denominator on the EUP.
        m = jnp.max(logits, axis=1, keepdims=True)
        p = jnp.exp(logits - m)
        w = (p * pl.reciprocal(jnp.sum(p, axis=1, keepdims=True),
                               approx=True)).astype(jnp.bfloat16)    # (Vb, F, T)

        # attn[b, t, d] = sum_f w[b, f, t] * vh[b, f, d]  (batched over videos)
        ah = jax.lax.dot_general(
            w, vh, (((1,), (1,)), ((0,), (0,))),
            preferred_element_type=jnp.float32)                      # (Vb, T, Dh)
        attn_ref[:, :, lo:lo + head_dim] = ah.astype(jnp.bfloat16)

    # ONE lane-dense, full-depth out_proj GEMM over the concatenated heads.
    attn = attn_ref[...].reshape(vb * t, e)
    out = (jnp.dot(attn, wot_ref[...], preferred_element_type=jnp.float32)
           + bo_ref[...])                                            # (Vb*T, Ep)
    o_ref[...] = out.reshape(vb, t, ep).astype(o_ref.dtype)


def fused_mha(cls_bf16, prompt_bf16, wqt, bq, wkt, bk, wvt, bv, wot_p, bo_p, *,
              num_heads, head_dim, video_block, out_dtype, vmem_limit_bytes):
    t, e = cls_bf16.shape
    vp, f, _ = prompt_bf16.shape
    ep = wot_p.shape[1]

    # Single-buffer the constant-index (resident) weight/bias/cls blocks once
    # the weights are large enough for double-buffering to matter (halves
    # their VMEM footprint -- the difference between fitting and not fitting
    # v7x's 64 MiB at large E).  Left at the default for tiny E.
    const_kw = {}
    if 2 * (3 * e * e + e * ep) > (1 << 20):
        const_kw = dict(pipeline_mode=pl.Buffered(1))

    kernel = functools.partial(_fused_mha_kernel,
                               num_heads=num_heads, head_dim=head_dim)
    return pl.pallas_call(
        kernel,
        out_shape=jax.ShapeDtypeStruct((vp, t, ep), out_dtype),
        grid=(vp // video_block,),
        in_specs=[
            pl.BlockSpec((t, e), lambda i: (0, 0), **const_kw),          # cls
            pl.BlockSpec((video_block, f, e), lambda i: (i, 0, 0)),      # prompt (streamed)
            pl.BlockSpec((e, e), lambda i: (0, 0), **const_kw),          # WqT (scaled)
            pl.BlockSpec((1, e), lambda i: (0, 0), **const_kw),          # bq  (scaled)
            pl.BlockSpec((e, e), lambda i: (0, 0), **const_kw),          # WkT
            pl.BlockSpec((1, e), lambda i: (0, 0), **const_kw),          # bk
            pl.BlockSpec((e, e), lambda i: (0, 0), **const_kw),          # WvT
            pl.BlockSpec((1, e), lambda i: (0, 0), **const_kw),          # bv
            pl.BlockSpec((e, ep), lambda i: (0, 0), **const_kw),         # WoT (padded)
            pl.BlockSpec((1, ep), lambda i: (0, 0), **const_kw),         # bo  (padded)
        ],
        out_specs=pl.BlockSpec((video_block, t, ep), lambda i: (i, 0, 0)),
        scratch_shapes=[pltpu.VMEM((video_block, t, e), jnp.bfloat16)],  # head slab
        compiler_params=pltpu.CompilerParams(
            dimension_semantics=("parallel",),
            vmem_limit_bytes=vmem_limit_bytes),
    )(cls_bf16, prompt_bf16, wqt, bq, wkt, bk, wvt, bv, wot_p, bo_p)


# ----------------------------------------------------------------------------
# VMEM budgeting: size the video block and the scoped-VMEM limit explicitly.
# ----------------------------------------------------------------------------
def _vmem_estimate_bytes(vb, t, f, e, ep, out_itemsize):
    """Rough per-step resident VMEM estimate (bytes)."""
    weights = 2 * (3 * e * e + e * ep)            # WqT/WkT/WvT/WoT, bf16, 1-buffered
    biases = 4 * (3 * e + ep)                     # f32
    cls_q = 2 * t * e * 2                         # cls block + q value, bf16
    prompt = 2 * (2 * vb * f * e)                 # bf16 prompt, double-buffered
    out_blk = 2 * vb * t * ep * out_itemsize      # double-buffered output block
    attn_slab = 2 * vb * t * e                    # bf16 scratch slab
    kv_vals = 2 * (2 * vb * f * e)                # k, v bf16 values
    kv_f32 = 4 * vb * f * e                       # one f32 projection result live
    head_tmp = 4 * vb * f * t + 4 * vb * t * ep   # logits f32 + out_proj f32
    return (weights + biases + cls_q + prompt + out_blk + attn_slab
            + kv_vals + kv_f32 + head_tmp)


def _choose_video_block(num_vids, t, f, e, ep, out_itemsize,
                        max_block=32, target_bytes=40 << 20):
    """Largest video block that fits the VMEM target, then rebalanced so the
    grid has >=2 (nearly equal) steps: minimal zero-padding waste and both
    v7x TensorCores get useful work on the 'parallel' video axis."""
    vb = max(1, min(max_block, num_vids))
    while vb > 1 and _vmem_estimate_bytes(vb, t, f, e, ep,
                                          out_itemsize) > target_bytes:
        vb -= 1
    steps = max(2, _cdiv(num_vids, vb)) if num_vids >= 2 else 1
    vb = _cdiv(num_vids, steps)
    return vb, steps


# ----------------------------------------------------------------------------
# Module wrapper with deterministic parameter init (PyTorch Linear shapes).
# Weight transposes / scaling / padding / bf16 casts happen ONCE at init.
# ----------------------------------------------------------------------------
class MultiHeadedAttentionPallas:
    def __init__(self, embed_dim, num_mha_heads, key, max_video_block=32):
        assert embed_dim % num_mha_heads == 0
        self.embed_dim = embed_dim
        self.num_heads = num_mha_heads
        self.head_dim = embed_dim // num_mha_heads
        self.max_video_block = max_video_block

        keys = jax.random.split(key, 8)
        bound = 1.0 / math.sqrt(embed_dim)
        u = lambda k, s: jax.random.uniform(k, s, jnp.float32, -bound, bound)
        self.wq, self.bq = u(keys[0], (embed_dim, embed_dim)), u(keys[1], (embed_dim,))
        self.wk, self.bk = u(keys[2], (embed_dim, embed_dim)), u(keys[3], (embed_dim,))
        self.wv, self.bv = u(keys[4], (embed_dim, embed_dim)), u(keys[5], (embed_dim,))
        self.wo, self.bo = u(keys[6], (embed_dim, embed_dim)), u(keys[7], (embed_dim,))

        # Kernel-ready parameters (pre-transposed, bf16, 1/sqrt(Dh) folded in).
        scale = 1.0 / math.sqrt(self.head_dim)
        self.wqT_s = (self.wq.T * scale).astype(jnp.bfloat16)          # (E, E)
        self.bq_s = (self.bq * scale).reshape(1, embed_dim)            # f32
        self.wkT = self.wk.T.astype(jnp.bfloat16)
        self.bk2 = self.bk.reshape(1, embed_dim)
        self.wvT = self.wv.T.astype(jnp.bfloat16)
        self.bv2 = self.bv.reshape(1, embed_dim)

        # Lane-dense out_proj: pad the output feature dim to a multiple of 128
        # so final stores are unmasked vst (sliced back in the wrapper).
        self.e_pad = _round_up(embed_dim, 128)
        self.woT_p = (jnp.zeros((embed_dim, self.e_pad), jnp.bfloat16)
                      .at[:, :embed_dim].set(self.wo.T.astype(jnp.bfloat16)))
        self.bo_p = (jnp.zeros((1, self.e_pad), jnp.float32)
                     .at[:, :embed_dim].set(self.bo))
        # TODO(synk): for very large E (>=2048) on v7x, stream WkT/WvT/WoT in
        # output-feature tiles (extra grid axis) instead of keeping full (E,E)
        # weights resident, and consider fp8 weights for the v7x MXU.

    def __call__(self, cls_embeds, prompt_embeds):
        num_texts = cls_embeds.shape[0]
        num_vids, num_frames, _ = prompt_embeds.shape
        out_dtype = cls_embeds.dtype
        out_isize = jnp.dtype(out_dtype).itemsize

        # Stream activations in bf16: halves the dominant prompt HBM->VMEM DMA
        # traffic and the double-buffered prompt VMEM footprint.
        cls_bf16 = cls_embeds.astype(jnp.bfloat16)
        prompt_bf16 = prompt_embeds.astype(jnp.bfloat16)

        vb, steps = _choose_video_block(
            num_vids, num_texts, num_frames, self.embed_dim, self.e_pad,
            out_isize, max_block=self.max_video_block)
        vp = vb * steps
        if vp != num_vids:                       # minimal tail padding only
            pad = jnp.zeros((vp - num_vids, num_frames, self.embed_dim),
                            jnp.bfloat16)
            prompt_bf16 = jnp.concatenate([prompt_bf16, pad], axis=0)

        est = _vmem_estimate_bytes(vb, num_texts, num_frames, self.embed_dim,
                                   self.e_pad, out_isize)
        # Explicit scoped-VMEM limit (v5e default is ~16 MiB); capped at 64 MiB
        # so the same setting is valid on v7x's smaller physical VMEM.
        vmem_limit = int(min(64 << 20, max(32 << 20, int(1.5 * est) + (2 << 20))))

        out = fused_mha(
            cls_bf16, prompt_bf16,
            self.wqT_s, self.bq_s, self.wkT, self.bk2, self.wvT, self.bv2,
            self.woT_p, self.bo_p,
            num_heads=self.num_heads, head_dim=self.head_dim,
            video_block=vb, out_dtype=out_dtype,
            vmem_limit_bytes=vmem_limit)                       # (Vp, T, Ep)

        return out[:num_vids, :, :self.embed_dim]              # (V, T, E)


# ----------------------------------------------------------------------------
# Pure-JAX reference (mirrors the PyTorch forward op-for-op, f32 weights).
# ----------------------------------------------------------------------------
def reference_forward(mod, cls_embeds, prompt_embeds):
    T = cls_embeds.shape[0]
    V, F, E = prompt_embeds.shape
    H, Dh = mod.num_heads, mod.head_dim
    q = cls_embeds @ mod.wq.T + mod.bq
    q = q.reshape(T, H, Dh).transpose(1, 2, 0)                          # (H,Dh,T)
    k = (prompt_embeds @ mod.wk.T + mod.bk).reshape(V, F, H, Dh).transpose(0, 2, 1, 3)
    v = (prompt_embeds @ mod.wv.T + mod.bv).reshape(V, F, H, Dh).transpose(0, 2, 3, 1)
    logits = jnp.einsum('vhfd,hdt->vhft', k, q) / math.sqrt(Dh)
    w = jax.nn.softmax(logits, axis=2)
    attn = jnp.einsum('vhdf,vhft->vhdt', v, w)
    attn = attn.transpose(0, 3, 1, 2).reshape(V, T, E)
    return attn @ mod.wo.T + mod.bo


if __name__ == "__main__":
    embed_dim = 32
    num_heads = 4
    num_texts = 8
    num_vids = 10          # not a power of two -> exercises balanced blocking
    num_frames = 8

    key = jax.random.PRNGKey(0)
    k_mod, k_cls, k_prm = jax.random.split(key, 3)

    module = MultiHeadedAttentionPallas(embed_dim, num_heads, k_mod)

    cls_embeds = jax.random.normal(k_cls, (num_texts, embed_dim), jnp.float32)
    prompt_embeds = jax.random.normal(k_prm, (num_vids, num_frames, embed_dim),
                                      jnp.float32)

    out = module(cls_embeds, prompt_embeds)
    out = jax.block_until_ready(out)

    ref = reference_forward(module, cls_embeds, prompt_embeds)
    # Tolerance is bf16-level: kernel uses bf16 MXU operands (f32 accumulation)
    # and an approximate reciprocal for the softmax denominator.
    np.testing.assert_allclose(np.asarray(out, dtype=np.float32),
                               np.asarray(ref), rtol=2e-2, atol=2e-2)
    assert out.shape == (num_vids, num_texts, embed_dim)
    print("KERNEL_OK")
</pallas_src>

<mosaic_0001>
module attributes {stable_mosaic.version = 11 : i64} {
  func.func @_fused_mha_kernel(%arg0: i32, %arg1: memref<8x32xbf16, #tpu.memory_space<vmem>>, %arg2: memref<5x8x32xbf16, #tpu.memory_space<vmem>>, %arg3: memref<32x32xbf16, #tpu.memory_space<vmem>>, %arg4: memref<1x32xf32, #tpu.memory_space<vmem>>, %arg5: memref<32x32xbf16, #tpu.memory_space<vmem>>, %arg6: memref<1x32xf32, #tpu.memory_space<vmem>>, %arg7: memref<32x32xbf16, #tpu.memory_space<vmem>>, %arg8: memref<1x32xf32, #tpu.memory_space<vmem>>, %arg9: memref<32x128xbf16, #tpu.memory_space<vmem>>, %arg10: memref<1x128xf32, #tpu.memory_space<vmem>>, %arg11: memref<5x8x128xf32, #tpu.memory_space<vmem>>, %arg12: memref<5x8x32xbf16, #tpu.memory_space<vmem>>) attributes {dimension_semantics = [#tpu.dimension_semantics<parallel>], iteration_bounds = array<i64: 2>, scalar_prefetch = 0 : i64, scratch_operands = 1 : i64, tpu.core_type = #tpu.core_type<tc>, window_params = [{pipeline_mode = #tpu.pipeline_mode<synchronous>, transform_indices = @transform_0, window_bounds = array<i64: 8, 32>}, {transform_indices = @transform_1, window_bounds = array<i64: 5, 8, 32>}, {pipeline_mode = #tpu.pipeline_mode<synchronous>, transform_indices = @transform_2, window_bounds = array<i64: 32, 32>}, {pipeline_mode = #tpu.pipeline_mode<synchronous>, transform_indices = @transform_3, window_bounds = array<i64: 1, 32>}, {pipeline_mode = #tpu.pipeline_mode<synchronous>, transform_indices = @transform_4, window_bounds = array<i64: 32, 32>}, {pipeline_mode = #tpu.pipeline_mode<synchronous>, transform_indices = @transform_5, window_bounds = array<i64: 1, 32>}, {pipeline_mode = #tpu.pipeline_mode<synchronous>, transform_indices = @transform_6, window_bounds = array<i64: 32, 32>}, {pipeline_mode = #tpu.pipeline_mode<synchronous>, transform_indices = @transform_7, window_bounds = array<i64: 1, 32>}, {pipeline_mode = #tpu.pipeline_mode<synchronous>, transform_indices = @transform_8, window_bounds = array<i64: 32, 128>}, {pipeline_mode = #tpu.pipeline_mode<synchronous>, transform_indices = @transform_9, window_bounds = array<i64: 1, 128>}, {transform_indices = @transform_10, window_bounds = array<i64: 5, 8, 128>}]} {
    %c0 = arith.constant 0 : index
    %c0_0 = arith.constant 0 : index
    %0 = vector.load %arg1[%c0, %c0_0] : memref<8x32xbf16, #tpu.memory_space<vmem>>, vector<8x32xbf16>
    %c0_1 = arith.constant 0 : index
    %c0_2 = arith.constant 0 : index
    %1 = vector.load %arg3[%c0_1, %c0_2] : memref<32x32xbf16, #tpu.memory_space<vmem>>, vector<32x32xbf16>
    %cst = arith.constant dense<0.000000e+00> : vector<8x32xf32>
    %2 = tpu.matmul %0, %1, %cst {dimension_numbers = #tpu.dot_dimension_numbers<[1], [0], [0], [1], [0, 0, 1, 1], [], []>} : vector<8x32xbf16>, vector<32x32xbf16>, vector<8x32xf32> -> vector<8x32xf32>
    %c0_3 = arith.constant 0 : index
    %c0_4 = arith.constant 0 : index
    %3 = vector.load %arg4[%c0_3, %c0_4] : memref<1x32xf32, #tpu.memory_space<vmem>>, vector<1x32xf32>
    %4 = vector.broadcast %3 : vector<1x32xf32> to vector<8x32xf32>
    %5 = arith.addf %2, %4 : vector<8x32xf32>
    %6 = arith.truncf %5 : vector<8x32xf32> to vector<8x32xbf16>
    %c0_5 = arith.constant 0 : index
    %c0_6 = arith.constant 0 : index
    %c0_7 = arith.constant 0 : index
    %7 = vector.load %arg2[%c0_5, %c0_6, %c0_7] : memref<5x8x32xbf16, #tpu.memory_space<vmem>>, vector<5x8x32xbf16>
    %8 = vector.shape_cast %7 : vector<5x8x32xbf16> to vector<40x32xbf16>
    %c0_8 = arith.constant 0 : index
    %c0_9 = arith.constant 0 : index
    %9 = vector.load %arg5[%c0_8, %c0_9] : memref<32x32xbf16, #tpu.memory_space<vmem>>, vector<32x32xbf16>
    %cst_10 = arith.constant dense<0.000000e+00> : vector<40x32xf32>
    %10 = tpu.matmul %8, %9, %cst_10 {dimension_numbers = #tpu.dot_dimension_numbers<[1], [0], [0], [1], [0, 0, 1, 1], [], []>} : vector<40x32xbf16>, vector<32x32xbf16>, vector<40x32xf32> -> vector<40x32xf32>
    %c0_11 = arith.constant 0 : index
    %c0_12 = arith.constant 0 : index
    %11 = vector.load %arg6[%c0_11, %c0_12] : memref<1x32xf32, #tpu.memory_space<vmem>>, vector<1x32xf32>
    %12 = vector.broadcast %11 : vector<1x32xf32> to vector<40x32xf32>
    %13 = arith.addf %10, %12 : vector<40x32xf32>
    %14 = arith.truncf %13 : vector<40x32xf32> to vector<40x32xbf16>
    %c0_13 = arith.constant 0 : index
    %c0_14 = arith.constant 0 : index
    %15 = vector.load %arg7[%c0_13, %c0_14] : memref<32x32xbf16, #tpu.memory_space<vmem>>, vector<32x32xbf16>
    %cst_15 = arith.constant dense<0.000000e+00> : vector<40x32xf32>
    %16 = tpu.matmul %8, %15, %cst_15 {dimension_numbers = #tpu.dot_dimension_numbers<[1], [0], [0], [1], [0, 0, 1, 1], [], []>} : vector<40x32xbf16>, vector<32x32xbf16>, vector<40x32xf32> -> vector<40x32xf32>
    %c0_16 = arith.constant 0 : index
    %c0_17 = arith.constant 0 : index
    %17 = vector.load %arg8[%c0_16, %c0_17] : memref<1x32xf32, #tpu.memory_space<vmem>>, vector<1x32xf32>
    %18 = vector.broadcast %17 : vector<1x32xf32> to vector<40x32xf32>
    %19 = arith.addf %16, %18 : vector<40x32xf32>
    %20 = arith.truncf %19 : vector<40x32xf32> to vector<40x32xbf16>
    %21 = vector.extract_strided_slice %14 {offsets = [0, 0], sizes = [40, 8], strides = [1, 1]} : vector<40x32xbf16> to vector<40x8xbf16>
    %22 = vector.extract_strided_slice %6 {offsets = [0, 0], sizes = [8, 8], strides = [1, 1]} : vector<8x32xbf16> to vector<8x8xbf16>
    %23 = vector.extract_strided_slice %20 {offsets = [0, 0], sizes = [40, 8], strides = [1, 1]} : vector<40x32xbf16> to vector<40x8xbf16>
    %24 = vector.shape_cast %23 : vector<40x8xbf16> to vector<5x8x8xbf16>
    %cst_18 = arith.constant dense<0.000000e+00> : vector<40x8xf32>
    %25 = tpu.matmul %21, %22, %cst_18 {dimension_numbers = #tpu.dot_dimension_numbers<[1], [1], [0], [0], [0, 0, 1, 0], [], []>} : vector<40x8xbf16>, vector<8x8xbf16>, vector<40x8xf32> -> vector<40x8xf32>
    %26 = vector.shape_cast %25 : vector<40x8xf32> to vector<5x8x8xf32>
    %cst_19 = arith.constant dense<0xFF800000> : vector<5x8xf32>
    %27 = vector.multi_reduction <maximumf>, %26, %cst_19 [1] : vector<5x8x8xf32> to vector<5x8xf32>
    %28 = vector.shape_cast %27 : vector<5x8xf32> to vector<5x1x8xf32>
    %29 = vector.broadcast %28 : vector<5x1x8xf32> to vector<5x8x8xf32>
    %30 = arith.subf %26, %29 : vector<5x8x8xf32>
    %31 = math.exp %30 : vector<5x8x8xf32>
    %cst_20 = arith.constant dense<0.000000e+00> : vector<5x8xf32>
    %32 = vector.multi_reduction <add>, %31, %cst_20 [1] : vector<5x8x8xf32> to vector<5x8xf32>
    %33 = vector.shape_cast %32 : vector<5x8xf32> to vector<5x1x8xf32>
    %34 = tpu.reciprocal %33 {approx = true} : vector<5x1x8xf32> -> vector<5x1x8xf32>
    %35 = vector.broadcast %34 : vector<5x1x8xf32> to vector<5x8x8xf32>
    %36 = arith.mulf %31, %35 : vector<5x8x8xf32>
    %37 = arith.truncf %36 : vector<5x8x8xf32> to vector<5x8x8xbf16>
    %cst_21 = arith.constant dense<0.000000e+00> : vector<5x8x8xf32>
    %38 = tpu.matmul %37, %24, %cst_21 {dimension_numbers = #tpu.dot_dimension_numbers<[1], [1], [2], [2], [0, 0, 0, 2, 1, 2], [0], [0]>} : vector<5x8x8xbf16>, vector<5x8x8xbf16>, vector<5x8x8xf32> -> vector<5x8x8xf32>
    %39 = arith.truncf %38 : vector<5x8x8xf32> to vector<5x8x8xbf16>
    %c0_22 = arith.constant 0 : index
    %c0_23 = arith.constant 0 : index
    %c0_24 = arith.constant 0 : index
    %40 = vector.load %arg12[%c0_22, %c0_23, %c0_24] : memref<5x8x32xbf16, #tpu.memory_space<vmem>>, vector<5x8x8xbf16>
    tpu.vector_store %arg12[%c0_22, %c0_23, %c0_24], %39 {strides = array<i32>} : memref<5x8x32xbf16, #tpu.memory_space<vmem>>, vector<5x8x8xbf16>,
    %41 = vector.extract_strided_slice %14 {offsets = [0, 8], sizes = [40, 8], strides = [1, 1]} : vector<40x32xbf16> to vector<40x8xbf16>
    %42 = vector.extract_strided_slice %6 {offsets = [0, 8], sizes = [8, 8], strides = [1, 1]} : vector<8x32xbf16> to vector<8x8xbf16>
    %43 = vector.extract_strided_slice %20 {offsets = [0, 8], sizes = [40, 8], strides = [1, 1]} : vector<40x32xbf16> to vector<40x8xbf16>
    %44 = vector.shape_cast %43 : vector<40x8xbf16> to vector<5x8x8xbf16>
    %cst_25 = arith.constant dense<0.000000e+00> : vector<40x8xf32>
    %45 = tpu.matmul %41, %42, %cst_25 {dimension_numbers = #tpu.dot_dimension_numbers<[1], [1], [0], [0], [0, 0, 1, 0], [], []>} : vector<40x8xbf16>, vector<8x8xbf16>, vector<40x8xf32> -> vector<40x8xf32>
    %46 = vector.shape_cast %45 : vector<40x8xf32> to vector<5x8x8xf32>
    %cst_26 = arith.constant dense<0xFF800000> : vector<5x8xf32>
    %47 = vector.multi_reduction <maximumf>, %46, %cst_26 [1] : vector<5x8x8xf32> to vector<5x8xf32>
    %48 = vector.shape_cast %47 : vector<5x8xf32> to vector<5x1x8xf32>
    %49 = vector.broadcast %48 : vector<5x1x8xf32> to vector<5x8x8xf32>
    %50 = arith.subf %46, %49 : vector<5x8x8xf32>
    %51 = math.exp %50 : vector<5x8x8xf32>
    %cst_27 = arith.constant dense<0.000000e+00> : vector<5x8xf32>
    %52 = vector.multi_reduction <add>, %51, %cst_27 [1] : vector<5x8x8xf32> to vector<5x8xf32>
    %53 = vector.shape_cast %52 : vector<5x8xf32> to vector<5x1x8xf32>
    %54 = tpu.reciprocal %53 {approx = true} : vector<5x1x8xf32> -> vector<5x1x8xf32>
    %55 = vector.broadcast %54 : vector<5x1x8xf32> to vector<5x8x8xf32>
    %56 = arith.mulf %51, %55 : vector<5x8x8xf32>
    %57 = arith.truncf %56 : vector<5x8x8xf32> to vector<5x8x8xbf16>
    %cst_28 = arith.constant dense<0.000000e+00> : vector<5x8x8xf32>
    %58 = tpu.matmul %57, %44, %cst_28 {dimension_numbers = #tpu.dot_dimension_numbers<[1], [1], [2], [2], [0, 0, 0, 2, 1, 2], [0], [0]>} : vector<5x8x8xbf16>, vector<5x8x8xbf16>, vector<5x8x8xf32> -> vector<5x8x8xf32>
    %59 = arith.truncf %58 : vector<5x8x8xf32> to vector<5x8x8xbf16>
    %c0_29 = arith.constant 0 : index
    %c0_30 = arith.constant 0 : index
    %c8 = arith.constant 8 : index
    %60 = vector.load %arg12[%c0_29, %c0_30, %c8] : memref<5x8x32xbf16, #tpu.memory_space<vmem>>, vector<5x8x8xbf16>
    tpu.vector_store %arg12[%c0_29, %c0_30, %c8], %59 {strides = array<i32>} : memref<5x8x32xbf16, #tpu.memory_space<vmem>>, vector<5x8x8xbf16>,
    %61 = vector.extract_strided_slice %14 {offsets = [0, 16], sizes = [40, 8], strides = [1, 1]} : vector<40x32xbf16> to vector<40x8xbf16>
    %62 = vector.extract_strided_slice %6 {offsets = [0, 16], sizes = [8, 8], strides = [1, 1]} : vector<8x32xbf16> to vector<8x8xbf16>
    %63 = vector.extract_strided_slice %20 {offsets = [0, 16], sizes = [40, 8], strides = [1, 1]} : vector<40x32xbf16> to vector<40x8xbf16>
    %64 = vector.shape_cast %63 : vector<40x8xbf16> to vector<5x8x8xbf16>
    %cst_31 = arith.constant dense<0.000000e+00> : vector<40x8xf32>
    %65 = tpu.matmul %61, %62, %cst_31 {dimension_numbers = #tpu.dot_dimension_numbers<[1], [1], [0], [0], [0, 0, 1, 0], [], []>} : vector<40x8xbf16>, vector<8x8xbf16>, vector<40x8xf32> -> vector<40x8xf32>
    %66 = vector.shape_cast %65 : vector<40x8xf32> to vector<5x8x8xf32>
    %cst_32 = arith.constant dense<0xFF800000> : vector<5x8xf32>
    %67 = vector.multi_reduction <maximumf>, %66, %cst_32 [1] : vector<5x8x8xf32> to vector<5x8xf32>
    %68 = vector.shape_cast %67 : vector<5x8xf32> to vector<5x1x8xf32>
    %69 = vector.broadcast %68 : vector<5x1x8xf32> to vector<5x8x8xf32>
    %70 = arith.subf %66, %69 : vector<5x8x8xf32>
    %71 = math.exp %70 : vector<5x8x8xf32>
    %cst_33 = arith.constant dense<0.000000e+00> : vector<5x8xf32>
    %72 = vector.multi_reduction <add>, %71, %cst_33 [1] : vector<5x8x8xf32> to vector<5x8xf32>
    %73 = vector.shape_cast %72 : vector<5x8xf32> to vector<5x1x8xf32>
    %74 = tpu.reciprocal %73 {approx = true} : vector<5x1x8xf32> -> vector<5x1x8xf32>
    %75 = vector.broadcast %74 : vector<5x1x8xf32> to vector<5x8x8xf32>
    %76 = arith.mulf %71, %75 : vector<5x8x8xf32>
    %77 = arith.truncf %76 : vector<5x8x8xf32> to vector<5x8x8xbf16>
    %cst_34 = arith.constant dense<0.000000e+00> : vector<5x8x8xf32>
    %78 = tpu.matmul %77, %64, %cst_34 {dimension_numbers = #tpu.dot_dimension_numbers<[1], [1], [2], [2], [0, 0, 0, 2, 1, 2], [0], [0]>} : vector<5x8x8xbf16>, vector<5x8x8xbf16>, vector<5x8x8xf32> -> vector<5x8x8xf32>
    %79 = arith.truncf %78 : vector<5x8x8xf32> to vector<5x8x8xbf16>
    %c0_35 = arith.constant 0 : index
    %c0_36 = arith.constant 0 : index
    %c16 = arith.constant 16 : index
    %80 = vector.load %arg12[%c0_35, %c0_36, %c16] : memref<5x8x32xbf16, #tpu.memory_space<vmem>>, vector<5x8x8xbf16>
    tpu.vector_store %arg12[%c0_35, %c0_36, %c16], %79 {strides = array<i32>} : memref<5x8x32xbf16, #tpu.memory_space<vmem>>, vector<5x8x8xbf16>,
    %81 = vector.extract_strided_slice %14 {offsets = [0, 24], sizes = [40, 8], strides = [1, 1]} : vector<40x32xbf16> to vector<40x8xbf16>
    %82 = vector.extract_strided_slice %6 {offsets = [0, 24], sizes = [8, 8], strides = [1, 1]} : vector<8x32xbf16> to vector<8x8xbf16>
    %83 = vector.extract_strided_slice %20 {offsets = [0, 24], sizes = [40, 8], strides = [1, 1]} : vector<40x32xbf16> to vector<40x8xbf16>
    %84 = vector.shape_cast %83 : vector<40x8xbf16> to vector<5x8x8xbf16>
    %cst_37 = arith.constant dense<0.000000e+00> : vector<40x8xf32>
    %85 = tpu.matmul %81, %82, %cst_37 {dimension_numbers = #tpu.dot_dimension_numbers<[1], [1], [0], [0], [0, 0, 1, 0], [], []>} : vector<40x8xbf16>, vector<8x8xbf16>, vector<40x8xf32> -> vector<40x8xf32>
    %86 = vector.shape_cast %85 : vector<40x8xf32> to vector<5x8x8xf32>
    %cst_38 = arith.constant dense<0xFF800000> : vector<5x8xf32>
    %87 = vector.multi_reduction <maximumf>, %86, %cst_38 [1] : vector<5x8x8xf32> to vector<5x8xf32>
    %88 = vector.shape_cast %87 : vector<5x8xf32> to vector<5x1x8xf32>
    %89 = vector.broadcast %88 : vector<5x1x8xf32> to vector<5x8x8xf32>
    %90 = arith.subf %86, %89 : vector<5x8x8xf32>
    %91 = math.exp %90 : vector<5x8x8xf32>
    %cst_39 = arith.constant dense<0.000000e+00> : vector<5x8xf32>
    %92 = vector.multi_reduction <add>, %91, %cst_39 [1] : vector<5x8x8xf32> to vector<5x8xf32>
    %93 = vector.shape_cast %92 : vector<5x8xf32> to vector<5x1x8xf32>
    %94 = tpu.reciprocal %93 {approx = true} : vector<5x1x8xf32> -> vector<5x1x8xf32>
    %95 = vector.broadcast %94 : vector<5x1x8xf32> to vector<5x8x8xf32>
    %96 = arith.mulf %91, %95 : vector<5x8x8xf32>
    %97 = arith.truncf %96 : vector<5x8x8xf32> to vector<5x8x8xbf16>
    %cst_40 = arith.constant dense<0.000000e+00> : vector<5x8x8xf32>
    %98 = tpu.matmul %97, %84, %cst_40 {dimension_numbers = #tpu.dot_dimension_numbers<[1], [1], [2], [2], [0, 0, 0, 2, 1, 2], [0], [0]>} : vector<5x8x8xbf16>, vector<5x8x8xbf16>, vector<5x8x8xf32> -> vector<5x8x8xf32>
    %99 = arith.truncf %98 : vector<5x8x8xf32> to vector<5x8x8xbf16>
    %c0_41 = arith.constant 0 : index
    %c0_42 = arith.constant 0 : index
    %c24 = arith.constant 24 : index
    %100 = vector.load %arg12[%c0_41, %c0_42, %c24] : memref<5x8x32xbf16, #tpu.memory_space<vmem>>, vector<5x8x8xbf16>
    tpu.vector_store %arg12[%c0_41, %c0_42, %c24], %99 {strides = array<i32>} : memref<5x8x32xbf16, #tpu.memory_space<vmem>>, vector<5x8x8xbf16>,
    %c0_43 = arith.constant 0 : index
    %c0_44 = arith.constant 0 : index
    %c0_45 = arith.constant 0 : index
    %101 = vector.load %arg12[%c0_43, %c0_44, %c0_45] : memref<5x8x32xbf16, #tpu.memory_space<vmem>>, vector<5x8x32xbf16>
    %102 = vector.shape_cast %101 : vector<5x8x32xbf16> to vector<40x32xbf16>
    %c0_46 = arith.constant 0 : index
    %c0_47 = arith.constant 0 : index
    %103 = vector.load %arg9[%c0_46, %c0_47] : memref<32x128xbf16, #tpu.memory_space<vmem>>, vector<32x128xbf16>
    %cst_48 = arith.constant dense<0.000000e+00> : vector<40x128xf32>
    %104 = tpu.matmul %102, %103, %cst_48 {dimension_numbers = #tpu.dot_dimension_numbers<[1], [0], [0], [1], [0, 0, 1, 1], [], []>} : vector<40x32xbf16>, vector<32x128xbf16>, vector<40x128xf32> -> vector<40x128xf32>
    %c0_49 = arith.constant 0 : index
    %c0_50 = arith.constant 0 : index
    %105 = vector.load %arg10[%c0_49, %c0_50] : memref<1x128xf32, #tpu.memory_space<vmem>>, vector<1x128xf32>
    %106 = vector.broadcast %105 : vector<1x128xf32> to vector<40x128xf32>
    %107 = arith.addf %104, %106 : vector<40x128xf32>
    %108 = vector.shape_cast %107 : vector<40x128xf32> to vector<5x8x128xf32>
    %c0_51 = arith.constant 0 : index
    %c0_52 = arith.constant 0 : index
    %c0_53 = arith.constant 0 : index
    %109 = vector.load %arg11[%c0_51, %c0_52, %c0_53] : memref<5x8x128xf32, #tpu.memory_space<vmem>>, vector<5x8x128xf32>
    tpu.vector_store %arg11[%c0_51, %c0_52, %c0_53], %108 {strides = array<i32>} : memref<5x8x128xf32, #tpu.memory_space<vmem>>, vector<5x8x128xf32>,
    return
  }
  func.func @transform_0(%arg0: i32) -> (i32, i32) {
    %c0_i32 = arith.constant 0 : i32
    %c0_i32_0 = arith.constant 0 : i32
    %c0_i32_1 = arith.constant 0 : i32
    return %c0_i32, %c0_i32_0 : i32, i32
  }
  func.func @transform_1(%arg0: i32) -> (i32, i32, i32) {
    %c0_i32 = arith.constant 0 : i32
    %c0_i32_0 = arith.constant 0 : i32
    %c0_i32_1 = arith.constant 0 : i32
    return %arg0, %c0_i32, %c0_i32_0 : i32, i32, i32
  }
  func.func @transform_2(%arg0: i32) -> (i32, i32) {
    %c0_i32 = arith.constant 0 : i32
    %c0_i32_0 = arith.constant 0 : i32
    %c0_i32_1 = arith.constant 0 : i32
    return %c0_i32, %c0_i32_0 : i32, i32
  }
  func.func @transform_3(%arg0: i32) -> (i32, i32) {
    %c0_i32 = arith.constant 0 : i32
    %c0_i32_0 = arith.constant 0 : i32
    %c0_i32_1 = arith.constant 0 : i32
    return %c0_i32, %c0_i32_0 : i32, i32
  }
  func.func @transform_4(%arg0: i32) -> (i32, i32) {
    %c0_i32 = arith.constant 0 : i32
    %c0_i32_0 = arith.constant 0 : i32
    %c0_i32_1 = arith.constant 0 : i32
    return %c0_i32, %c0_i32_0 : i32, i32
  }
  func.func @transform_5(%arg0: i32) -> (i32, i32) {
    %c0_i32 = arith.constant 0 : i32
    %c0_i32_0 = arith.constant 0 : i32
    %c0_i32_1 = arith.constant 0 : i32
    return %c0_i32, %c0_i32_0 : i32, i32
  }
  func.func @transform_6(%arg0: i32) -> (i32, i32) {
    %c0_i32 = arith.constant 0 : i32
    %c0_i32_0 = arith.constant 0 : i32
    %c0_i32_1 = arith.constant 0 : i32
    return %c0_i32, %c0_i32_0 : i32, i32
  }
  func.func @transform_7(%arg0: i32) -> (i32, i32) {
    %c0_i32 = arith.constant 0 : i32
    %c0_i32_0 = arith.constant 0 : i32
    %c0_i32_1 = arith.constant 0 : i32
    return %c0_i32, %c0_i32_0 : i32, i32
  }
  func.func @transform_8(%arg0: i32) -> (i32, i32) {
    %c0_i32 = arith.constant 0 : i32
    %c0_i32_0 = arith.constant 0 : i32
    %c0_i32_1 = arith.constant 0 : i32
    return %c0_i32, %c0_i32_0 : i32, i32
  }
  func.func @transform_9(%arg0: i32) -> (i32, i32) {
    %c0_i32 = arith.constant 0 : i32
    %c0_i32_0 = arith.constant 0 : i32
    %c0_i32_1 = arith.constant 0 : i32
    return %c0_i32, %c0_i32_0 : i32, i32
  }
  func.func @transform_10(%arg0: i32) -> (i32, i32, i32) {
    %c0_i32 = arith.constant 0 : i32
    %c0_i32_0 = arith.constant 0 : i32
    %c0_i32_1 = arith.constant 0 : i32
    return %arg0, %c0_i32, %c0_i32_0 : i32, i32, i32
  }
}

</mosaic_0001>

<bundles_post_ra>
// kernel: tpu_custom_call.1
= control target key start
LH: loop header
LB: loop body
LE: loop exit
PB: predicated region body
PF: predicated region fallthrough
CT: control target
= control target key end

     0   :  { %s4725_s0 = inlined_call_operand.hbm [shape: bf16[8,32], index: 0, kind: input, shape index: {}]   ;;  %s4726_s1 = inlined_call_operand.hbm [shape: bf16[10,8,32], index: 1, kind: input, shape index: {}]   ;;  %s4727_s2 = inlined_call_operand.hbm [shape: bf16[32,32], index: 2, kind: input, shape index: {}]   ;;  %s4728_s3 = inlined_call_operand.vmem [shape: f32[1,32], index: 3, kind: input, shape index: {}]   ;;  %s4729_s4 = inlined_call_operand.hbm [shape: bf16[32,32], index: 4, kind: input, shape index: {}]   ;;  %s4730_s5 = inlined_call_operand.vmem [shape: f32[1,32], index: 5, kind: input, shape index: {}]   ;;  %s4731_s6 = inlined_call_operand.vmem [shape: bf16[32,32], index: 6, kind: input, shape index: {}]   ;;  %s4732_s7 = inlined_call_operand.vmem [shape: f32[1,32], index: 7, kind: input, shape index: {}]   ;;  %s4733_s8 = inlined_call_operand.hbm [shape: bf16[32,128], index: 8, kind: input, shape index: {}]   ;;  %s4734_s9 = inlined_call_operand.vmem [shape: f32[1,128], index: 9, kind: input, shape index: {}]   ;;  %s4735_s10 = inlined_call_operand.hbm [shape: f32[10,8,128], index: 10, kind: output, shape index: {}]  }
   0x1   :  { %4744 = sst [smem:[#allocation20_spill]] %s4734_s9 }
   0x2   :  { %4745 = sst [smem:[#allocation21_spill]] %s4735_s10 }
   0x3   :  { %15 = vsyncpa [#allocation4], 0 }
   0x4   :  { %16 = vsyncpa [#allocation7], 0 }
   0x5   :  { %18 = vsyncpa [#allocation7 + $0x1], 0 }
   0x6   :  { %19 = vsyncpa [#allocation10], 0 }
   0x7   :  { %20 = vsyncpa [#allocation5], 0 }
   0x8   :  { %22 = vsyncpa [#allocation5 + $0x1], 0  ;;  %s3972_s13 = smov 0   ;;  %s3974_s14 = smov 0  }
   0x9   :  { %s3976_s15 = smov 0   ;;  %s3978_s16 = smov 0  }
   0xa LB: > { %4746 = sst [smem:[#allocation18_spill]] %s3886_s13  ;;  %s3993_s17 = sadd.s32 4294967295, %s3898_s16   ;;  %s3898_s16 = sphi %s3978_s16, %s4775_s16   ;;  %s3894_s15 = sphi %s3976_s15, %s4774_s15   ;;  %s3890_s14 = sphi %s3974_s14, %s4773_s14   ;;  %s3886_s13 = sphi %s3972_s13, %s4772_s13  }
   0xb   : > { %s3054_s18 = sadd.s32 4294967294, %s3898_s16   ;;  %p69_p0 = scmp.ne.s32.totalorder %s3890_s14, %s3886_s13 }
   0xc   : > { %p4736_p1 = scmp.eq.s32.totalorder %s3993_s17, 0  ;;  %p267_p3 = scmp.eq.s32.totalorder %s3054_s18, 1 }
   0xd   : > { %p3055_p5 = scmp.ge.s32.totalorder %s3898_s16, 1  ;;  %p274_p7 = scmp.lt.s32.totalorder %s3898_s16, 3 }
   0xe   : > { %p4002_p4 = por %p4736_p1, %p69_p0  ;;  %p4007_p6 = por %p267_p3, %p69_p0 }
   0xf   : > { %p4012_p8 = pnand %p3055_p5, %p274_p7  ;;  %s3900_s22 = smov [#allocation8]  }
  0x10   : > { %s4747_s19 = scalar_select %p4002_p4, 1, 0 }
  0x11   : > { %s4748_s20 = scalar_select %p4007_p6, 1, 0 }
  0x12   : > { %s4750_s21 = scalar_select %p4012_p8, 1, 0 }
  0x13   : > { %4749 = sst [smem:[#allocation19_spill]] %s4748_s20  ;;  %s297_s23 = sshll.u32 %s3900_s22, 4  ;;  %s4016_s23 = int_to_ptr.vmem [resolvable:$true] %s297_s23 }
  0x14   : > { %p3505_p9 = pneg %p4012_p8  ;;  %s3901_s25 = smov [#allocation9]  }
  0x15   : > { %s313_s26 = sshll.u32 %s3901_s25, 4  ;;  %s3902_s27 = smov [#allocation3]   ;;  %s4027_s26 = int_to_ptr.vmem [resolvable:$true] %s313_s26 }
  0x16   : > { %p4023_p11 = pnand %p3505_p9, %p4736_p1  ;;  %s4029_s28 = sshll.u32 %s3902_s27, 4  ;;  %s288_s28 = int_to_ptr.vmem [resolvable:$true] %s4029_s28 }
  0x17   : > { %s3678_s11 = scalar_lea.hbm %s4727_s2, 256 }
  0x18   : > { %p3679_p12 = scmp.ne.s32.totalorder %s4727_s2, %s3678_s11  ;;  %p4039_p13 = pneg %p4023_p11 }
  0x19   : > { %p3685_p5 = scmp.lt.u32.totalorder %s3678_s11, %s4727_s2 }
  0x1a   : > { %p3681_p0 = pnand %p4039_p13, %p3679_p12 }
  0x1c   : > { %p3682_p3 = pneg %p3681_p0 }
  0x1e   : > { %p3687_p7 = pnand %p3685_p5, %p3682_p3 }
  0x20   : > { %3690 = shalt.err (!%p3687_p7)
}
  0x21   : > { %s3691_s29 = scalar_lea.vmem %s4016_s23, 256  ;;  %p3699_p2 = scmp.lt.s32.totalorder %s4016_s23, %s4016_s23 }
  0x22   : > { %p3692_p9 = scmp.ne.s32.totalorder %s4016_s23, %s3691_s29  ;;  %p3700_p6 = scmp.lt.s32.totalorder %s3691_s29, %s3691_s29 }
  0x24   : > { %p3694_p10 = pnand %p3692_p9, %p4039_p13  ;;  %p3701_p12 = por %p3700_p6, %p3699_p2 }
  0x26   : > { %p3695_p1 = pneg %p3694_p10 }
  0x28   : > { %p3702_p0 = pnand %p3701_p12, %p3695_p1 }
  0x2a   : > { %3705 = shalt.err (!%p3702_p0)
}
  0x2b   : > { %s4742_s30 = smov 64   ;;  %s4743_s11 = smov 4  }
  0x2c   : > { %3511 = dma.hbm_to_vmem [thread:$0]  (!%p4023_p11), %s4727_s2, 256, %s4016_s23, [#allocation7], %s4742_s30, %s4742_s30, %s4743_s11  }
  0x2d   : > { %s3706_s29 = scalar_lea.hbm %s4729_s4, 256 }
  0x2e   : > { %p3707_p1 = scmp.ne.s32.totalorder %s4729_s4, %s3706_s29  ;;  %p3713_p10 = scmp.lt.u32.totalorder %s3706_s29, %s4729_s4 }
  0x30   : > { %p3709_p2 = pnand %p3707_p1, %p4039_p13 }
  0x32   : > { %p3710_p6 = pneg %p3709_p2 }
  0x34   : > { %p3715_p3 = pnand %p3713_p10, %p3710_p6 }
  0x36   : > { %3718 = shalt.err (!%p3715_p3)
}
  0x37   : > { %s3719_s23 = scalar_lea.vmem %s4027_s26, 256  ;;  %p3727_p12 = scmp.lt.s32.totalorder %s4027_s26, %s4027_s26 }
  0x38   : > { %p3720_p5 = scmp.ne.s32.totalorder %s4027_s26, %s3719_s23  ;;  %p3728_p0 = scmp.lt.s32.totalorder %s3719_s23, %s3719_s23 }
  0x3a   : > { %p3722_p7 = pnand %p3720_p5, %p4039_p13  ;;  %p3729_p1 = por %p3728_p0, %p3727_p12 }
  0x3c   : > { %p3723_p9 = pneg %p3722_p7 }
  0x3e   : > { %p3730_p2 = pnand %p3729_p1, %p3723_p9 }
  0x40   : > { %3733 = shalt.err (!%p3730_p2)
}
  0x41   : > { %3514 = dma.hbm_to_vmem [thread:$0]  (!%p4023_p11), %s4729_s4, 256, %s4027_s26, [#allocation10], %s4742_s30, %s4742_s30, %s4743_s11  }
  0x42   : > { %s3734_s12 = scalar_lea.hbm %s4725_s0, 64 }
  0x43   : > { %p3735_p6 = scmp.ne.s32.totalorder %s4725_s0, %s3734_s12  ;;  %p3741_p5 = scmp.lt.u32.totalorder %s3734_s12, %s4725_s0 }
  0x45   : > { %p3737_p10 = pnand %p3735_p6, %p4039_p13 }
  0x47   : > { %p3738_p3 = pneg %p3737_p10 }
  0x49   : > { %p3743_p7 = pnand %p3741_p5, %p3738_p3 }
  0x4b   : > { %3746 = shalt.err (!%p3743_p7)
}
  0x4c   : > { %s3747_s23 = scalar_lea.vmem %s288_s28, 64  ;;  %p3755_p1 = scmp.lt.s32.totalorder %s288_s28, %s288_s28 }
  0x4d   : > { %p3748_p9 = scmp.ne.s32.totalorder %s288_s28, %s3747_s23  ;;  %p3756_p2 = scmp.lt.s32.totalorder %s3747_s23, %s3747_s23 }
  0x4f   : > { %p3750_p12 = pnand %p3748_p9, %p4039_p13  ;;  %p3757_p4 = por %p3756_p2, %p3755_p1 }
  0x51   : > { %p3751_p0 = pneg %p3750_p12 }
  0x53   : > { %p3758_p8 = pnand %p3757_p4, %p3751_p0 }
  0x55   : > { %3761 = shalt.err (!%p3758_p8)
}
  0x56   : > { %3508 = dma.hbm_to_vmem [thread:$0]  (!%p4023_p11), %s4725_s0, 64, %s288_s28, [#allocation4]  }
  0x57   : > { %s3905_s10 = smov [#allocation11]   ;;  %s3762_s18 = scalar_lea.hbm %s4733_s8, 256 }
  0x58   : > { %s335_s13 = sshll.u32 %s3905_s10, 4  ;;  %p3763_p6 = scmp.ne.s32.totalorder %s4733_s8, %s3762_s18  ;;  %s336_s13 = int_to_ptr.vmem [resolvable:$true] %s335_s13 }
  0x59   : > { %p3769_p10 = scmp.lt.u32.totalorder %s3762_s18, %s4733_s8 }
  0x5a   : > { %p3765_p4 = pnand %p3763_p6, %p4039_p13 }
  0x5c   : > { %p3766_p8 = pneg %p3765_p4 }
  0x5e   : > { %p3771_p3 = pnand %p3769_p10, %p3766_p8 }
  0x60   : > { %3774 = shalt.err (!%p3771_p3)
}
  0x61   : > { %s3775_s28 = scalar_lea.vmem %s336_s13, 256  ;;  %p3783_p12 = scmp.lt.s32.totalorder %s336_s13, %s336_s13 }
  0x62   : > { %p3776_p5 = scmp.ne.s32.totalorder %s336_s13, %s3775_s28  ;;  %p3784_p0 = scmp.lt.s32.totalorder %s3775_s28, %s3775_s28 }
  0x64   : > { %p3778_p7 = pnand %p3776_p5, %p4039_p13  ;;  %p3785_p1 = por %p3784_p0, %p3783_p12 }
  0x66   : > { %p3779_p9 = pneg %p3778_p7 }
  0x68   : > { %p3786_p2 = pnand %p3785_p1, %p3779_p9 }
  0x6a   : > { %3789 = shalt.err (!%p3786_p2)
}
  0x6b   : > { %3517 = dma.hbm_to_vmem [thread:$0]  (!%p4023_p11), %s4733_s8, 256, %s336_s13, [#allocation10], %s4742_s30, %s4742_s30, %s4743_s11  }
  0x6c   : > { %s4130_s24 = sadd.s32 1, %s3898_s16   ;;  %s56_s22 = sadd.s32 1, %s3894_s15 }
  0x6d   : > { %s53_s10 = ssub.s32 %s3898_s16, %s4130_s24  ;;  %p63_p13 = scmp.ne.s32.totalorder %s3894_s15, %s3890_s14 }
  0x6e   : > { %p54_p6 = scmp.eq.s32.totalorder %s53_s10, 0  ;;  %p64_p4 = scmp.eq.s32.totalorder %s3898_s16, 0 }
  0x6f   : > { %p4753_p8 = scmp.eq.s32.totalorder %s3993_s17, 1  ;;  %p3530_p3 = scmp.lt.s32.totalorder %s3898_s16, 2 }
  0x70   : > { %s4146_s12 = scalar_select %p54_p6, %s3894_s15, %s56_s22  }
  0x71   : > { %p4140_p10 = por %p4753_p8, %p63_p13  ;;  %p65_p5 = por %p64_p4, %p63_p13 }
  0x72   : > { %s352_s18 = sand.u32 1, %s3898_s16   ;;  %s354_s25 = sand.u32 1, %s3894_s15  }
  0x73   : > { %s3482_s13 = smul.u32 20, %s354_s25  ;;  %p4150_p11 = pnand %p3530_p3, %p65_p5 }
  0x74   : > { %s3150_s29 = smul.u32 320, %s3898_s16  ;;  %s4162_s10 = scalar_lea.sflag [#allocation7], %s352_s18 }
  0x75   : > { %s356_s9 = scalar_lea.vmem [#allocation6], %s3482_s13  ;;  %p3792_p9 = pneg %p4150_p11 }
  0x76   : > { %s4158_s26 = scalar_lea.hbm %s4726_s1, %s3150_s29  ;;  %s363_s22 = sshll.u32 %s356_s9, 4  ;;  %s4160_s22 = int_to_ptr.vmem [resolvable:$true] %s363_s22 }
  0x77   : > { %s3790_s25 = scalar_lea.hbm %s4158_s26, 320  ;;  %s3795_s28 = scalar_lea.hbm %s4726_s1, 640 }
  0x78   : > { %p3791_p7 = scmp.ne.s32.totalorder %s4158_s26, %s3790_s25  ;;  %p3796_p1 = scmp.lt.u32.totalorder %s4158_s26, %s4726_s1 }
  0x79   : > { %p3797_p2 = scmp.lt.u32.totalorder %s3795_s28, %s3790_s25  ;;  %p3799_p6 = scmp.lt.u32.totalorder %s3790_s25, %s4158_s26 }
  0x7a   : > { %p3793_p12 = pnand %p3792_p9, %p3791_p7 }
  0x7b   : > { %p3798_p13 = por %p3797_p2, %p3796_p1 }
  0x7c   : > { %p3794_p0 = pneg %p3793_p12 }
  0x7d   : > { %p3800_p4 = por %p3799_p6, %p3798_p13 }
  0x7f   : > { %p3801_p8 = pnand %p3800_p4, %p3794_p0 }
  0x81   : > { %3804 = shalt.err (!%p3801_p8)
}
  0x82   : > { %s3805_s18 = scalar_lea.vmem %s4160_s22, 320  ;;  %s3906_s13 = smov [#allocation6]  }
  0x83   : > { %p3806_p3 = scmp.ne.s32.totalorder %s4160_s22, %s3805_s18  ;;  %s3810_s9 = sshll.u32 %s3906_s13, 4  ;;  %s3811_s9 = int_to_ptr.vmem [resolvable:$false] %s3810_s9 }
  0x84   : > { %s3812_s30 = scalar_lea.vmem %s3811_s9, 640  ;;  %p3813_p12 = scmp.lt.s32.totalorder %s4160_s22, %s3811_s9 }
  0x85   : > { %p3808_p5 = pnand %p3806_p3, %p3792_p9  ;;  %p3814_p1 = scmp.lt.s32.totalorder %s3812_s30, %s3805_s18 }
  0x87   : > { %p3809_p7 = pneg %p3808_p5  ;;  %p3815_p2 = por %p3814_p1, %p3813_p12 }
  0x89   : > { %p3816_p13 = pnand %p3815_p2, %p3809_p7 }
  0x8b   : > { %3819 = shalt.err (!%p3816_p13)
}
  0x8c   : > { %s4756_s11 = smov 4   ;;  %s4757_s25 = smov 64  }
  0x8d   : > { %3521 = dma.hbm_to_vmem [thread:$0]  (!%p4150_p11), %s4158_s26, 320, %s4160_s22, %s4162_s10, %s4757_s25, %s4757_s25, %s4756_s11  }
  0x8e   : > { %p4758_p9 = scmp.ne.s32.totalorder %s4750_s21, 0 }
  0x8f   : > { %p4759_p0 = scmp.eq.s32.totalorder (!%p4758_p9), %s3993_s17, 0 }
  0x90   : > { %375 = sbr.rel (%p4758_p9) target bundleno = 2527 (0x9df), region = 60 }
  0x97   : > { %3865 = dma.done.wait (%p4759_p0), [#allocation4], 64   ;;  %p4760_p6 = pmov %p4759_p0 }
  0x98   : > { %s381_s27 = sand.u32 1, %s3993_s17   ;;  %s4201_s29 = sand.u32 1, %s3890_s14  }
  0x99   : > { %3867 = vsyncadd (%p4760_p6), [#allocation4], 4294967232  ;;  %s3483_s23 = smul.u32 20, %s4201_s29  ;;  %s382_s28 = scalar_lea.sflag [#allocation7], %s381_s27 }
  0x9a   : > { %p4761_p11 = scmp.ne.s32.totalorder %s4747_s19, 0 }
  0x9b   : > { %s4204_s18 = scalar_lea.vmem [#allocation6], %s3483_s23 }
  0x9c   : > { %3869 = dma.done.wait (%p4761_p11), %s382_s28, 320  }
  0x9d   : > { %3871 = vsyncadd (%p4761_p11), %s382_s28, 4294966976  ;;  %p4762_p4 = pmov %p4759_p0 }
  0x9e   : > { %p4763_p8 = pmov %p4759_p0 }
  0x9f   : > { %3873 = dma.done.wait (%p4762_p4), [#allocation7], 256  }
  0xa0   : > { %3875 = vsyncadd (%p4763_p8), [#allocation7], 4294967040  ;;  %p4764_p3 = pmov %p4759_p0 }
  0xa1   : > { %p4765_p5 = pmov %p4759_p0 }
  0xa2   : > { %3877 = dma.done.wait (%p4764_p3), [#allocation10], 512  }
  0xa3   : > { %3879 = vsyncadd (%p4765_p5), [#allocation10], 4294966784  ;;  %v3907_v0 = vmov 0.0   ;;  %vm3908_vm0 = vmmov 0   ;;  %v3584_v1 = vld [vmem:[#allocation8] sm:$0xff]   ;;  %v3585_v2 = vld [vmem:[#allocation8 + $0x8] sm:$0xff]  }
  0xa4   : > { %3246 = vmatprep.subr.bf16.mxu0 %v3907_v0  ;;  %3250 = vmatprep.mubr.msk.bf16.mxu0 %vm3908_vm0, %v3907_v0  ;;  %v3586_v3 = vld [vmem:[#allocation9] sm:$0xff]   ;;  %vm461_vm1 = vcmask 261120   ;;  %v3587_v5 = vld [vmem:[#allocation9 + $0x8] sm:$0xff]   ;;  %vm710_vm2 = vcmask 64512   ;;  %s3909_s11 = smov 120   ;;  %s3910_s23 = smov 112  }
  0xa5   : > { %3478 = vmatprep.subr.bf16.mxu1 %v3907_v0  ;;  %3262 = vmatprep.mubr.msk.bf16.mxu1 %vm3908_vm0, %v3907_v0  ;;  %v437_v4 = vld [vmem:[#allocation3] sm:$0xf]  ;;  %v3588_v7 = vld [vmem:[%s4204_s18] sm:$0xff]   ;;  %v3592_v9 = vld [vmem:[%s4204_s18 + $0x10] ss:$0 sps:$4 sm:$0xff]   ;;  %vm898_vm3 = vcmask 1043456  }
  0xa6   : > { %3247 = vmatpush3.bf16.msra.mxu0 %v3584_v1  ;;  %3480 = vmatpush3.bf16.msra.mxu1 %v3586_v3  ;;  %v3591_v6 = vld [vmem:[%s4204_s18 + $0x8] sm:$0xff]   ;;  %v3067_v11 = vld [vmem:[%s4728_s3] ss:$0 sm:$0xff]  ;;  %s3911_s28 = smov 104   ;;  %vm1195_vm4 = vcmask 60416   ;;  %s3912_s18 = smov 8  }
  0xa7   : > { %3248 = vmatprep.subr.bf16.mxu0 %v3907_v0  ;;  %3479 = vmatprep.subr.bf16.mxu1 %v3907_v0  ;;  %v3589_v8 = vld [vmem:[%s4731_s6] sm:$0xff]   ;;  %v3590_v10 = vld [vmem:[%s4731_s6 + $0x8] sm:$0xff]   ;;  %s3913_s19 = smov 16   ;;  %vm1736_vm5 = vcmask 126016   ;;  %vm2273_vm6 = vcmask 191616   ;;  %s3914_s21 = smov 24  }
  0xa8   : > { %v3071_v18 = vld [vmem:[%s4730_s5] ss:$0 sm:$0xff]  ;;  %vm2810_vm7 = vcmask 257216   ;;  %s3484_s26 = smul.u32 40, %s4201_s29  ;;  %s4766_s13 = sld [smem:[#allocation20_spill]] }
  0xa9   : > { %v4294_v42 = vld [vmem:[%s4732_s7] ss:$0 sm:$0xff] }
  0xaa   : > { %3249 = vmatpush3.bf16.msra.mxu0 %v3585_v2  ;;  %3481 = vmatpush3.bf16.msra.mxu1 %v3587_v5  ;;  %s433_s9 = scalar_lea.vmem [#allocation12], %s3484_s26 }
  0xab   : > { %3254 = vmatprep.subr.bf16.mxu0 %v3907_v0  ;;  %3286 = vmatprep.subr.bf16.mxu1 %v3907_v0  ;;  %s2941_s30 = sshll.u32 %s433_s9, 4  ;;  %s4675_s30 = int_to_ptr.vmem [resolvable:$true] %s2941_s30 }
  0xad   : > { %3251 = vmatmul.mubr.msk.bf16.vlgmr.msra.gmra.mrb[0].mxu0 %vm461_vm1, %v437_v4  ;;  %3263 = vmatmul.mubr.msk.bf16.vlgmr.msra.gmra.mrb[0].mxu1 %vm461_vm1, %v3591_v6 }
  0xae   : > { %3255 = vmatpush3.bf16.msra.mxu0 %v3586_v3  ;;  %3258 = vmatprep.mubr.msk.bf16.mxu0 %vm3908_vm0, %v3907_v0 }
  0xaf   : > { %3256 = vmatprep.subr.bf16.mxu0 %v3907_v0  ;;  %3266 = vmatprep.mubr.msk.bf16.mxu1 %vm3908_vm0, %v3907_v0 }
  0xb2   : > { %3257 = vmatpush3.bf16.msra.mxu0 %v3587_v5 }
  0xb3   : > { %3270 = vmatprep.subr.bf16.mxu0 %v3907_v0 }
  0xb5   : > { %3259 = vmatmul.mubr.msk.bf16.vlgmr.msra.gmra.mrb[4].mxu0 %vm461_vm1, %v3588_v7  ;;  %3267 = vmatmul.mubr.msk.bf16.gmra.mrb[4].mxu1 %vm461_vm1, %v3592_v9 }
  0xb6   : > { %3271 = vmatpush3.bf16.msra.mxu0 %v3589_v8  ;;  %3274 = vmatprep.mubr.msk.bf16.mxu0 %vm3908_vm0, %v3907_v0 }
  0xb7   : > { %3272 = vmatprep.subr.bf16.mxu0 %v3907_v0  ;;  %3288 = vmatprep.mubr.msk.bf16.mxu1 %vm3908_vm0, %v3907_v0 }
  0xba   : > { %3273 = vmatpush3.bf16.msra.mxu0 %v3590_v10 }
  0xbb   : > { %3300 = vmatprep.subr.bf16.mxu0 %v3907_v0 }
  0xbd   : > { %3275 = vmatmul.mubr.msk.bf16.vlgmr.msra.gmra.mrb[8].mxu0 %vm461_vm1, %v3588_v7 }
  0xbe   : > { %3278 = vmatprep.mubr.msk.bf16.mxu0 %vm3908_vm0, %v3907_v0 }
  0xc5   : > { %3279 = vmatmul.mubr.msk.bf16.gmra.mrb[12].mxu0 %vm461_vm1, %v3591_v6 }
  0xc6   : > { %3282 = vmatprep.mubr.msk.bf16.mxu0 %vm3908_vm0, %v3907_v0 }
  0xcd   : > { %3283 = vmatmul.mubr.msk.bf16.gmra.mrb[16].mxu0 %vm461_vm1, %v3592_v9 }
  0xce   : > { %3302 = vmatprep.mubr.msk.bf16.mxu0 %vm3908_vm0, %v3907_v0 }
 0x180   : > { %v499_v12 = vpop.f32.mrb[0].mxu0  ;;  %v598_v19 = vpop.f32.mrb[0].mxu1 }
 0x181   : > { %v500_v13 = vadd.f32 %v3067_v11, %v499_v12  ;;  %v3252_v14 = vpop.f32.mrb[1].mxu0  ;;  %v599_v20 = vadd.f32 %v3071_v18, %v598_v19  ;;  %v3264_v21 = vpop.f32.mrb[1].mxu1 }
 0x182   : > { %v502_v15 = vpop.f32.mrb[2].mxu0  ;;  %v601_v23 = vpop.f32.mrb[2].mxu1 }
 0x183   : > { %v4265_v16 = vpack.c.bf16 %v500_v13, %v500_v13  ;;  %v3253_v17 = vpop.f32.mrb[3].mxu0  ;;  %v602_v24 = vadd.f32 %v3071_v18, %v601_v23  ;;  %v3265_v25 = vpop.f32.mrb[3].mxu1 }
 0x185   : > { %1211 = vrot.lane.b32.xlu0 %v4265_v16, %s3909_s11  ;;  %v721_v22 = vsel %vm710_vm2, %v4265_v16, 0  ;;  %v4275_v27 = vpack.c.bf16 %v602_v24, %v599_v20 }
 0x186   : > { %3287 = vmatpush3.bf16.xpose.msra.mxu1 %v721_v22 }
 0x187   : > { %3318 = vmatprep.subr.bf16.mxu1 %v3907_v0  ;;  %1206 = vrot.lane.b32.xlu1 %v4275_v27, %s3909_s11 }
 0x188   : > { %v590_v26 = vpop.f32.mrb[4].mxu0  ;;  %v606_v33 = vpop.f32.mrb[4].mxu1 }
 0x189   : > { %v3260_v28 = vpop.f32.mrb[5].mxu0  ;;  %v591_v30 = vadd.f32 %v3071_v18, %v590_v26  ;;  %v3268_v34 = vpop.f32.mrb[5].mxu1  ;;  %v607_v45 = vadd.f32 %v3071_v18, %v606_v33 }
 0x18a   : > { %v593_v29 = vpop.f32.mrb[6].mxu0  ;;  %v609_v36 = vpop.f32.mrb[6].mxu1 }
 0x18b   : > { %v594_v31 = vadd.f32 %v3071_v18, %v593_v29  ;;  %v3261_v32 = vpop.f32.mrb[7].mxu0  ;;  %v3269_v37 = vpop.f32.mrb[7].mxu1  ;;  %v4303_v50 = vpack.c.bf16 %v607_v45, %v607_v45 }
 0x18d   : > { %v4279_v35 = vpack.c.bf16 %v594_v31, %v591_v30 }
 0x18f   : > { %3289 = vmatmul.mubr.msk.bf16.vlgmr.msra.gmra.mrb[8].mxu1 %vm710_vm2, %v4279_v35  ;;  %1204 = vrot.lane.b32.xlu0 %v4279_v35, %s3909_s11 }
 0x190   : > { %v672_v38 = vpop.f32.mrb[8].mxu0  ;;  %3292 = vmatprep.mubr.msk.bf16.mxu1 %vm3908_vm0, %v3907_v0 }
 0x191   : > { %v3276_v39 = vpop.f32.mrb[9].mxu0  ;;  %v673_v51 = vadd.f32 %v4294_v42, %v672_v38 }
 0x192   : > { %v4287_v40 = vpop.f32.mrb[10].mxu0 }
 0x193   : > { %v3277_v41 = vpop.f32.mrb[11].mxu0  ;;  %v4320_v52 = vpack.c.bf16 %v673_v51, %v673_v51 }
 0x195   : > { %v900_v53 = vsel %vm898_vm3, %v4320_v52, 0 }
 0x196   : > { %3301 = vmatpush3.bf16.msra.mxu0 %v900_v53 }
 0x197   : > { %3293 = vmatmul.mubr.msk.bf16.gmra.mrb[12].mxu1 %vm710_vm2, %v4275_v27  ;;  %3306 = vmatprep.subr.bf16.mxu0 %v3907_v0 }
 0x198   : > { %v4296_v43 = vpop.f32.mrb[12].mxu0  ;;  %3296 = vmatprep.mubr.msk.bf16.mxu1 %vm3908_vm0, %v3907_v0 }
 0x199   : > { %v3280_v44 = vpop.f32.mrb[13].mxu0 }
 0x19a   : > { %v683_v46 = vpop.f32.mrb[14].mxu0 }
 0x19b   : > { %v684_v47 = vadd.f32 %v4294_v42, %v683_v46  ;;  %v3281_v48 = vpop.f32.mrb[15].mxu0 }
 0x19d   : > { %v4301_v49 = vpack.c.bf16 %v684_v47, %v684_v47 }
 0x19f   : > { %1589 = vrot.lane.b32.xlu0 %v4301_v49, %s3909_s11  ;;  %3297 = vmatmul.mubr.msk.bf16.gmra.mrb[16].mxu1 %vm710_vm2, %v4303_v50  ;;  %v1086_v54 = vsel %vm898_vm3, %v4301_v49, 0 }
 0x1a0   : > { %3320 = vmatprep.mubr.msk.bf16.mxu1 %vm3908_vm0, %v3907_v0  ;;  %3319 = vmatpush3.bf16.msra.mxu1 %v1086_v54  ;;  %v4362_v33 = vpop.f32.mrb[16].mxu0 }
 0x1a1   : > { %3330 = vmatprep.subr.bf16.mxu1 %v3907_v0  ;;  %v3284_v34 = vpop.f32.mrb[17].mxu0 }
 0x1a3   : > { %1208 = vrot.lane.b32.xlu0 %v4303_v50, %s3909_s11 }
 0x1a7   : > { %1748 = vrot.lane.b32.xlu0 %v4265_v16, %s3910_s23 }
 0x1ab   : > { %1742 = vrot.lane.b32.xlu0 %v4279_v35, %s3910_s23 }
 0x1af   : > { %1744 = vrot.lane.b32.xlu0 %v4275_v27, %s3910_s23 }
 0x1f7   : > { %v1212_v26 = vpop.permute.xlu0 %1211 }
 0x1f8   : > { %v1223_v29 = vsel %vm710_vm2, %v1212_v26, 0 }
 0x1f9   : > { %v1207_v25 = vpop.permute.xlu1 %1206 }
 0x201   : > { %v1205_v30 = vpop.permute.xlu0 %1204 }
 0x211   : > { %v1590_v31 = vpop.permute.xlu0 %1589 }
 0x215   : > { %v1209_v32 = vpop.permute.xlu0 %1208 }
 0x262   : > { %v4328_v55 = vpop.f32.mrb[8].mxu1 }
 0x263   : > { %v3290_v56 = vpop.f32.mrb[9].mxu1 }
 0x264   : > { %v4330_v57 = vpop.f32.mrb[10].mxu1 }
 0x265   : > { %v3291_v58 = vpop.f32.mrb[11].mxu1 }
 0x26a   : > { %v4332_v59 = vpop.f32.mrb[12].mxu1 }
 0x26b   : > { %v3294_v60 = vpop.f32.mrb[13].mxu1 }
 0x26c   : > { %v768_v61 = vpop.f32.mrb[14].mxu1 }
 0x26d   : > { %v800_v62 = vsel %vm710_vm2, %v768_v61, -inf  ;;  %v3295_v63 = vpop.f32.mrb[15].mxu1 }
 0x26e   : > { %v801_v1 = vrot.slane %v800_v62, 4 }
 0x270   : > { %v802_v2 = vmax.f32 %v800_v62, %v801_v1  ;;  %v779_v62 = vsel %vm710_vm2, %v4328_v55, -inf }
 0x272   : > { %v803_v3 = vrot.slane %v802_v2, 2  ;;  %v4336_v13 = vpop.f32.mrb[16].mxu1 }
 0x273   : > { %v3298_v15 = vpop.f32.mrb[17].mxu1 }
 0x274   : > { %v804_v4 = vmax.f32 %v802_v2, %v803_v3  ;;  %v776_v17 = vpop.f32.mrb[18].mxu1 }
 0x275   : > { %v3299_v19 = vpop.f32.mrb[19].mxu1 }
 0x276   : > { %v805_v5 = vrot.slane %v804_v4, 1 }
 0x278   : > { %v806_v6 = vmax.f32 %v804_v4, %v805_v5  ;;  %v780_v5 = vrot.slane %v779_v62, 4 }
 0x27a   : > { %v817_v7 = vsub.f32 %v768_v61, %v806_v6 }
 0x27c   : > { %v825_v8 = vmul.f32 1.442695, %v817_v7  ;;  %v807_v7 = vsel %vm710_vm2, %v4336_v13, -inf }
 0x27e   : > { %3598 = vpow2.f32 %v825_v8 }
 0x288   : > { %v3599_v9 = vpop.eup %3598 }
 0x289   : > { %v850_v10 = vsel %vm710_vm2, %v3599_v9, 0.0 }
 0x28a   : > { %v851_v11 = vrot.slane %v850_v10, 4 }
 0x28c   : > { %v852_v12 = vadd.f32 %v851_v11, %v850_v10  ;;  %v781_v10 = vmax.f32 %v779_v62, %v780_v5  ;;  %v808_v11 = vrot.slane %v807_v7, 4 }
 0x28e   : > { %v853_v14 = vrot.slane %v852_v12, 2  ;;  %v782_v15 = vrot.slane %v781_v10, 2  ;;  %v809_v17 = vmax.f32 %v807_v7, %v808_v11 }
 0x290   : > { %v854_v18 = vadd.f32 %v853_v14, %v852_v12  ;;  %v810_v19 = vrot.slane %v809_v17, 2 }
 0x292   : > { %v855_v20 = vrot.slane %v854_v18, 1 }
 0x294   : > { %v856_v21 = vadd.f32 %v855_v20, %v854_v18  ;;  %v783_v18 = vmax.f32 %v781_v10, %v782_v15 }
 0x296   : > { %3600 = vrcp.f32 %v856_v21  ;;  %v784_v20 = vrot.slane %v783_v18, 1  ;;  %v811_v21 = vmax.f32 %v809_v17, %v810_v19 }
 0x2a0   : > { %v3601_v22 = vpop.eup %3600 }
 0x2a1   : > { %v872_v23 = vmul.f32 %v3601_v22, %v3599_v9 }
 0x2a3   : > { %v877_v24 = vpack.c.bf16 %v872_v23, %v872_v23  ;;  %v785_v23 = vmax.f32 %v783_v18, %v784_v20 }
 0x2a5   : > { %1066 = vxpose.xlu1.c.b16.start.end [1/1] (short) (narrow) %v877_v24, 16  ;;  %v812_v24 = vrot.slane %v811_v21, 1 }
 0x2a9   : > { %2126 = vrot.lane.b32.xlu1 %v4301_v49, %s3910_s23 }
 0x2ad   : > { %1746 = vrot.lane.b32.xlu1 %v4303_v50, %s3910_s23 }
 0x2b1   : > { %2285 = vrot.lane.b32.xlu1 %v4265_v16, %s3911_s28  ;;  %v1595_v16 = vsel %vm898_vm3, %v1590_v31, 0 }
 0x2b5   : > { %2279 = vrot.lane.b32.xlu1 %v4279_v35, %s3911_s28  ;;  %v691_v35 = vpop.f32.mrb[18].mxu0 }
 0x2b6   : > { %v3285_v36 = vpop.f32.mrb[19].mxu0 }
 0x30b   : > { %v1074_v28 = vpop.trf.xlu1 }
 0x30c   : > { %3321 = vmatmul.mubr.msk.bf16.vlgmr.msra.gmra.mrb[20].mxu1 %vm710_vm2, %v1074_v28 }
 0x30d   : > { %3331 = vmatpush3.bf16.xpose.msra.mxu1 %v1223_v29  ;;  %3332 = vmatprep.mubr.msk.bf16.mxu1 %vm3908_vm0, %v3907_v0  ;;  %v814_v29 = vsub.f32 %v4328_v55, %v785_v23 }
 0x30e   : > { %3362 = vmatprep.subr.bf16.mxu1 %v3907_v0 }
 0x314   : > { %3333 = vmatmul.mubr.msk.bf16.vlgmr.msra.gmra.mrb[24].mxu1 %vm710_vm2, %v1205_v30  ;;  %v813_v30 = vmax.f32 %v811_v21, %v812_v24 }
 0x315   : > { %3336 = vmatprep.mubr.msk.bf16.mxu1 %vm3908_vm0, %v3907_v0  ;;  %3363 = vmatpush3.bf16.msra.mxu1 %v1595_v16 }
 0x316   : > { %3374 = vmatprep.subr.bf16.mxu1 %v3907_v0  ;;  %v818_v34 = vsub.f32 %v4336_v13, %v813_v30 }
 0x31c   : > { %3337 = vmatmul.mubr.msk.bf16.gmra.mrb[28].mxu1 %vm710_vm2, %v1207_v25 }
 0x31d   : > { %3340 = vmatprep.mubr.msk.bf16.mxu1 %vm3908_vm0, %v3907_v0 }
 0x324   : > { %3341 = vmatmul.mubr.msk.bf16.gmra.mrb[32].mxu1 %vm710_vm2, %v1209_v32  ;;  %v819_v32 = vmul.f32 1.442695, %v814_v29 }
 0x325   : > { %3364 = vmatprep.mubr.msk.bf16.mxu1 %vm3908_vm0, %v3907_v0 }
 0x3df   : > { %v1122_v37 = vpop.f32.mrb[20].mxu1 }
 0x3e0   : > { %v1193_v38 = vpack.c.bf16 %v1122_v37, %v1122_v37  ;;  %v3322_v39 = vpop.f32.mrb[21].mxu1  ;;  %v827_v37 = vmul.f32 1.442695, %v818_v34  ;;  %v689_v34 = vadd.f32 %v4294_v42, %v4362_v33 }
 0x3e1   : > { %v1125_v41 = vpop.f32.mrb[22].mxu1 }
 0x3e2   : > { %1199 = vst.msk [vmem:[#allocation2 + $0xc] sm:$0xf] %vm1195_vm4, %v1193_v38  ;;  %v3323_v44 = vpop.f32.mrb[23].mxu1 }
 0x3e7   : > { %v4365_v45 = vpop.f32.mrb[24].mxu1 }
 0x3e8   : > { %v3334_v46 = vpop.f32.mrb[25].mxu1 }
 0x3e9   : > { %v4367_v47 = vpop.f32.mrb[26].mxu1 }
 0x3ea   : > { %v3335_v48 = vpop.f32.mrb[27].mxu1 }
 0x3ef   : > { %v4369_v51 = vpop.f32.mrb[28].mxu1 }
 0x3f0   : > { %v3338_v53 = vpop.f32.mrb[29].mxu1 }
 0x3f1   : > { %v1270_v54 = vpop.f32.mrb[30].mxu1  ;;  %v1288_v53 = vsel %vm710_vm2, %v4367_v47, -inf }
 0x3f2   : > { %v1302_v56 = vsel %vm710_vm2, %v1270_v54, -inf  ;;  %v3339_v58 = vpop.f32.mrb[31].mxu1 }
 0x3f3   : > { %v1303_v60 = vrot.slane %v1302_v56, 4 }
 0x3f5   : > { %v1304_v61 = vmax.f32 %v1302_v56, %v1303_v60 }
 0x3f7   : > { %v1305_v63 = vrot.slane %v1304_v61, 2  ;;  %v4374_v1 = vpop.f32.mrb[32].mxu1 }
 0x3f8   : > { %v3342_v2 = vpop.f32.mrb[33].mxu1  ;;  %v1309_v60 = vsel %vm710_vm2, %v4374_v1, -inf }
 0x3f9   : > { %v1306_v3 = vmax.f32 %v1304_v61, %v1305_v63  ;;  %v1278_v4 = vpop.f32.mrb[34].mxu1  ;;  %v1310_v62 = vrot.slane %v1309_v60, 4 }
 0x3fa   : > { %v3343_v6 = vpop.f32.mrb[35].mxu1 }
 0x3fb   : > { %v1307_v8 = vrot.slane %v1306_v3, 1  ;;  %v1311_v4 = vmax.f32 %v1309_v60, %v1310_v62 }
 0x3fd   : > { %v1308_v9 = vmax.f32 %v1306_v3, %v1307_v8  ;;  %v1312_v8 = vrot.slane %v1311_v4, 2 }
 0x3ff   : > { %v1319_v12 = vsub.f32 %v1270_v54, %v1308_v9  ;;  %v1289_v54 = vrot.slane %v1288_v53, 4 }
 0x401   : > { %v1327_v14 = vmul.f32 1.442695, %v1319_v12  ;;  %v1290_v61 = vmax.f32 %v1288_v53, %v1289_v54  ;;  %v1313_v12 = vmax.f32 %v1311_v4, %v1312_v8  ;;  %v1749_v54 = vpop.permute.xlu0 %1748 }
 0x402   : > { %v1760_v4 = vsel %vm710_vm2, %v1749_v54, 0 }
 0x403   : > { %3602 = vpow2.f32 %v1327_v14  ;;  %v1291_v3 = vrot.slane %v1290_v61, 2  ;;  %v1314_v18 = vrot.slane %v1313_v12, 1 }
 0x404   : > { %3604 = vpow2.f32 %v819_v32 }
 0x405   : > { %v1292_v7 = vmax.f32 %v1290_v61, %v1291_v3  ;;  %v1315_v20 = vmax.f32 %v1313_v12, %v1314_v18  ;;  %v1743_v60 = vpop.permute.xlu0 %1742  ;;  %v786_v12 = vsel %vm710_vm2, %v4330_v57, -inf }
 0x407   : > { %v1293_v11 = vrot.slane %v1292_v7, 1 }
 0x409   : > { %v1294_v17 = vmax.f32 %v1292_v7, %v1293_v11 }
 0x40d   : > { %v3603_v22 = vpop.eup %3602 }
 0x40e   : > { %v1352_v25 = vsel %vm710_vm2, %v3603_v22, 0.0  ;;  %v3605_v38 = vpop.eup %3604 }
 0x40f   : > { %v1353_v26 = vrot.slane %v1352_v25, 4  ;;  %v829_v44 = vsel %vm710_vm2, %v3605_v38, 0.0 }
 0x410   : > { %v830_v55 = vrot.slane %v829_v44, 4 }
 0x411   : > { %v1354_v28 = vadd.f32 %v1353_v26, %v1352_v25 }
 0x412   : > { %v831_v56 = vadd.f32 %v830_v55, %v829_v44 }
 0x413   : > { %v1355_v31 = vrot.slane %v1354_v28, 2 }
 0x414   : > { %v832_v63 = vrot.slane %v831_v56, 2 }
 0x415   : > { %v1356_v16 = vadd.f32 %v1355_v31, %v1354_v28 }
 0x416   : > { %v833_v5 = vadd.f32 %v832_v63, %v831_v56 }
 0x417   : > { %v1357_v35 = vrot.slane %v1356_v16, 1 }
 0x418   : > { %v834_v9 = vrot.slane %v833_v5, 1 }
 0x419   : > { %v1358_v36 = vadd.f32 %v1357_v35, %v1356_v16  ;;  %v676_v16 = vadd.f32 %v4294_v42, %v4287_v40 }
 0x41a   : > { %v835_v14 = vadd.f32 %v834_v9, %v833_v5  ;;  %v2127_v5 = vpop.permute.xlu1 %2126 }
 0x41b   : > { %3606 = vrcp.f32 %v1358_v36  ;;  %v4399_v35 = vpack.c.bf16 %v676_v16, %v676_v16 }
 0x41c   : > { %3608 = vpow2.f32 %v827_v37 }
 0x41d   : > { %3610 = vrcp.f32 %v835_v14  ;;  %v962_v11 = vsel %vm898_vm3, %v4399_v35, 0  ;;  %v787_v14 = vrot.slane %v786_v12, 4 }
 0x41e   : > { %v1747_v7 = vpop.permute.xlu1 %1746 }
 0x425   : > { %v3607_v39 = vpop.eup %3606 }
 0x426   : > { %v1374_v41 = vmul.f32 %v3607_v39, %v3603_v22  ;;  %v3609_v46 = vpop.eup %3608  ;;  %v1320_v22 = vsub.f32 %v4374_v1, %v1315_v20 }
 0x427   : > { %v857_v13 = vsel %vm710_vm2, %v3609_v46, 0.0 }
 0x428   : > { %v1379_v48 = vpack.c.bf16 %v1374_v41, %v1374_v41  ;;  %v858_v58 = vrot.slane %v857_v13, 4  ;;  %v1329_v23 = vmul.f32 1.442695, %v1320_v22 }
 0x42a   : > { %1573 = vxpose.xlu0.c.b16.start.end [1/1] (short) (narrow) %v1379_v48, 16  ;;  %v859_v2 = vadd.f32 %v858_v58, %v857_v13 }
 0x42c   : > { %v860_v6 = vrot.slane %v859_v2, 2 }
 0x42e   : > { %v861_v10 = vadd.f32 %v860_v6, %v859_v2  ;;  %v1745_v2 = vpop.permute.xlu0 %1744  ;;  %v2132_v6 = vsel %vm898_vm3, %v2127_v5, 0 }
 0x430   : > { %v862_v15 = vrot.slane %v861_v10, 1 }
 0x432   : > { %v863_v19 = vadd.f32 %v862_v15, %v861_v10  ;;  %v788_v15 = vmax.f32 %v786_v12, %v787_v14  ;;  %v1295_v12 = vsel %vm710_vm2, %v4369_v51, -inf }
 0x433   : > { %2281 = vrot.lane.b32.xlu0 %v4275_v27, %s3911_s28  ;;  %v1317_v27 = vsub.f32 %v4367_v47, %v1294_v17 }
 0x434   : > { %3612 = vrcp.f32 %v863_v19  ;;  %v789_v17 = vrot.slane %v788_v15, 2 }
 0x435   : > { %v1323_v21 = vmul.f32 1.442695, %v1317_v27 }
 0x436   : > { %v790_v18 = vmax.f32 %v788_v15, %v789_v17 }
 0x437   : > { %2283 = vrot.lane.b32.xlu0 %v4303_v50, %s3911_s28  ;;  %v3611_v50 = vpop.eup %3610  ;;  %3614 = vpow2.f32 %v1323_v21 }
 0x438   : > { %v869_v24 = vmul.f32 %v3611_v50, %v3605_v38  ;;  %3616 = vpow2.f32 %v1329_v23  ;;  %v4401_v38 = vpack.c.bf16 %v689_v34, %v689_v34  ;;  %v791_v20 = vrot.slane %v790_v18, 1 }
 0x43a   : > { %v874_v26 = vpack.c.bf16 %v869_v24, %v869_v24  ;;  %v792_v50 = vmax.f32 %v790_v18, %v791_v20 }
 0x43e   : > { %v3613_v25 = vpop.eup %3612 }
 0x43f   : > { %v873_v28 = vmul.f32 %v3613_v25, %v3609_v46  ;;  %v815_v25 = vsub.f32 %v4330_v57, %v792_v50 }
 0x441   : > { %v3615_v29 = vpop.eup %3614  ;;  %v878_v30 = vpack.c.bf16 %v873_v28, %v873_v28 }
 0x442   : > { %v1338_v31 = vsel %vm710_vm2, %v3615_v29, 0.0  ;;  %v3617_v47 = vpop.eup %3616 }
 0x443   : > { %v1339_v32 = vrot.slane %v1338_v31, 4  ;;  %v1359_v1 = vsel %vm710_vm2, %v3617_v47, 0.0 }
 0x444   : > { %v1360_v37 = vrot.slane %v1359_v1, 4 }
 0x445   : > { %v1340_v36 = vadd.f32 %v1339_v32, %v1338_v31  ;;  %v821_v31 = vmul.f32 1.442695, %v815_v25 }
 0x446   : > { %v1361_v41 = vadd.f32 %v1360_v37, %v1359_v1 }
 0x447   : > { %v1341_v39 = vrot.slane %v1340_v36, 2 }
 0x448   : > { %v1362_v44 = vrot.slane %v1361_v41, 2 }
 0x449   : > { %v1342_v40 = vadd.f32 %v1341_v39, %v1340_v36 }
 0x44a   : > { %v1363_v46 = vadd.f32 %v1362_v44, %v1361_v41 }
 0x44b   : > { %v1343_v33 = vrot.slane %v1342_v40, 1 }
 0x44c   : > { %v1364_v55 = vrot.slane %v1363_v46, 1 }
 0x44d   : > { %v1344_v48 = vadd.f32 %v1343_v33, %v1342_v40  ;;  %v793_v33 = vsel %vm710_vm2, %v4332_v59, -inf }
 0x44e   : > { %v1365_v53 = vadd.f32 %v1364_v55, %v1363_v46  ;;  %v794_v54 = vrot.slane %v793_v33, 4 }
 0x44f   : > { %3618 = vrcp.f32 %v1344_v48 }
 0x450   : > { %3620 = vrcp.f32 %v1365_v53  ;;  %v795_v5 = vmax.f32 %v793_v33, %v794_v54 }
 0x451   : > { %3622 = vpow2.f32 %v821_v31 }
 0x452   : > { %v796_v18 = vrot.slane %v795_v5, 2 }
 0x454   : > { %v797_v25 = vmax.f32 %v795_v5, %v796_v18 }
 0x455   : > { %879 = vxpose.xlu0.c.b16.start.end [1/1] (short) (narrow) %v874_v26, 16 }
 0x459   : > { %1128 = vxpose.xlu0.c.b16.start.end [1/1] (short) (narrow) %v878_v30, 16  ;;  %v3619_v13 = vpop.eup %3618 }
 0x45a   : > { %v1372_v56 = vmul.f32 %v3619_v13, %v3615_v29  ;;  %v3621_v58 = vpop.eup %3620 }
 0x45b   : > { %v1375_v62 = vmul.f32 %v3621_v58, %v3617_v47 }
 0x45c   : > { %v1377_v61 = vpack.c.bf16 %v1372_v56, %v1372_v56 }
 0x45d   : > { %v1380_v63 = vpack.c.bf16 %v1375_v62, %v1375_v62 }
 0x462   : > { %1461 = vrot.lane.b32.xlu0 %v4399_v35, %s3909_s11 }
 0x466   : > { %1653 = vrot.lane.b32.xlu0 %v4401_v38, %s3909_s11 }
 0x46a   : > { %1998 = vrot.lane.b32.xlu0 %v4399_v35, %s3910_s23 }
 0x488   : > { %1445 = vxpose.xlu0.c.b16.start.end [1/1] (short) (narrow) %v1377_v61, 16 }
 0x48c   : > { %1637 = vxpose.xlu0.c.b16.start.end [1/1] (short) (narrow) %v1380_v63, 16  ;;  %v4449_v63 = vpop.eup %3622 }
 0x490   : > { %v1581_v3 = vpop.trf.xlu0 }
 0x491   : > { %3365 = vmatmul.mubr.msk.bf16.vlgmr.msra.gmra.mrb[36].mxu1 %vm710_vm2, %v1581_v3 }
 0x492   : > { %3375 = vmatpush3.bf16.xpose.msra.mxu1 %v1760_v4  ;;  %3376 = vmatprep.mubr.msk.bf16.mxu1 %vm3908_vm0, %v3907_v0 }
 0x493   : > { %3406 = vmatprep.subr.bf16.mxu1 %v3907_v0 }
 0x499   : > { %3377 = vmatmul.mubr.msk.bf16.vlgmr.msra.gmra.mrb[40].mxu1 %vm710_vm2, %v1743_v60 }
 0x49a   : > { %3407 = vmatpush3.bf16.msra.mxu1 %v2132_v6  ;;  %3380 = vmatprep.mubr.msk.bf16.mxu1 %vm3908_vm0, %v3907_v0 }
 0x49b   : > { %3418 = vmatprep.subr.bf16.mxu1 %v3907_v0 }
 0x4a1   : > { %3381 = vmatmul.mubr.msk.bf16.gmra.mrb[44].mxu1 %vm710_vm2, %v1745_v2  ;;  %v1281_v2 = vsel %vm710_vm2, %v4365_v45, -inf }
 0x4a2   : > { %3384 = vmatprep.mubr.msk.bf16.mxu1 %vm3908_vm0, %v3907_v0 }
 0x4a5   : > { %v4425_v8 = vpop.permute.xlu0 %2281 }
 0x4a9   : > { %3385 = vmatmul.mubr.msk.bf16.gmra.mrb[48].mxu1 %vm710_vm2, %v1747_v7  ;;  %v4427_v9 = vpop.permute.xlu0 %2283  ;;  %v836_v7 = vsel %vm710_vm2, %v4449_v63, 0.0 }
 0x4aa   : > { %3408 = vmatprep.mubr.msk.bf16.mxu1 %vm3908_vm0, %v3907_v0  ;;  %v837_v17 = vrot.slane %v836_v7, 4 }
 0x4bb   : > { %v887_v10 = vpop.trf.xlu0 }
 0x4bc   : > { %3303 = vmatmul.mubr.msk.bf16.vlgmr.msra.gmra.mrb[20].mxu0 %vm710_vm2, %v887_v10  ;;  %v1282_v10 = vrot.slane %v1281_v2, 4 }
 0x4bd   : > { %3307 = vmatpush3.bf16.msra.mxu0 %v962_v11  ;;  %3308 = vmatprep.mubr.msk.bf16.mxu0 %vm3908_vm0, %v3907_v0 }
 0x4be   : > { %3312 = vmatprep.subr.bf16.mxu0 %v3907_v0  ;;  %v1283_v20 = vmax.f32 %v1281_v2, %v1282_v10 }
 0x564   : > { %v4437_v19 = vpop.f32.mrb[36].mxu1 }
 0x565   : > { %v3366_v27 = vpop.f32.mrb[37].mxu1 }
 0x566   : > { %v1634_v21 = vpop.f32.mrb[38].mxu1 }
 0x567   : > { %v3367_v22 = vpop.f32.mrb[39].mxu1  ;;  %v1296_v21 = vrot.slane %v1295_v12, 4 }
 0x56c   : > { %v4439_v23 = vpop.f32.mrb[40].mxu1 }
 0x56d   : > { %v3378_v24 = vpop.f32.mrb[41].mxu1 }
 0x56e   : > { %v1799_v26 = vpop.f32.mrb[42].mxu1  ;;  %v838_v24 = vadd.f32 %v837_v17, %v836_v7 }
 0x56f   : > { %v1825_v28 = vsel %vm710_vm2, %v1799_v26, -inf  ;;  %v3379_v29 = vpop.f32.mrb[43].mxu1 }
 0x570   : > { %v1826_v30 = vrot.slane %v1825_v28, 4 }
 0x572   : > { %v1827_v47 = vmax.f32 %v1825_v28, %v1826_v30  ;;  %v1297_v28 = vmax.f32 %v1295_v12, %v1296_v21 }
 0x574   : > { %v1828_v16 = vrot.slane %v1827_v47, 2  ;;  %v4443_v32 = vpop.f32.mrb[44].mxu1 }
 0x575   : > { %v3382_v1 = vpop.f32.mrb[45].mxu1 }
 0x576   : > { %v1829_v34 = vmax.f32 %v1827_v47, %v1828_v16  ;;  %v1807_v36 = vpop.f32.mrb[46].mxu1  ;;  %v839_v47 = vrot.slane %v838_v24, 2  ;;  %v798_v16 = vrot.slane %v797_v25, 1 }
 0x577   : > { %v1839_v37 = vsel %vm710_vm2, %v1807_v36, -inf  ;;  %v3383_v39 = vpop.f32.mrb[47].mxu1 }
 0x578   : > { %v1830_v41 = vrot.slane %v1829_v34, 1  ;;  %v1840_v40 = vrot.slane %v1839_v37, 4 }
 0x57a   : > { %v1831_v57 = vmax.f32 %v1829_v34, %v1830_v41  ;;  %v1841_v44 = vmax.f32 %v1839_v37, %v1840_v40  ;;  %v799_v40 = vmax.f32 %v797_v25, %v798_v16 }
 0x57c   : > { %v1854_v46 = vsub.f32 %v1799_v26, %v1831_v57  ;;  %v1842_v48 = vrot.slane %v1841_v44, 2  ;;  %v1812_v55 = vpop.f32.mrb[48].mxu1  ;;  %v1284_v26 = vrot.slane %v1283_v20, 2 }
 0x57d   : > { %v1846_v53 = vsel %vm710_vm2, %v1812_v55, -inf  ;;  %v3386_v13 = vpop.f32.mrb[49].mxu1 }
 0x57e   : > { %v1860_v56 = vmul.f32 1.442695, %v1854_v46  ;;  %v1843_v58 = vmax.f32 %v1841_v44, %v1842_v48  ;;  %v1815_v60 = vpop.f32.mrb[50].mxu1  ;;  %v1847_v61 = vrot.slane %v1846_v53, 4  ;;  %v1285_v34 = vmax.f32 %v1283_v20, %v1284_v26 }
 0x57f   : > { %v3387_v62 = vpop.f32.mrb[51].mxu1  ;;  %v840_v44 = vadd.f32 %v839_v47, %v838_v24 }
 0x580   : > { %3624 = vpow2.f32 %v1860_v56  ;;  %v1844_v3 = vrot.slane %v1843_v58, 1  ;;  %v1848_v4 = vmax.f32 %v1846_v53, %v1847_v61  ;;  %v1286_v33 = vrot.slane %v1285_v34, 1 }
 0x581   : > { %v816_v56 = vsub.f32 %v4332_v59, %v799_v40 }
 0x582   : > { %v1845_v6 = vmax.f32 %v1843_v58, %v1844_v3  ;;  %v1849_v11 = vrot.slane %v1848_v4, 2  ;;  %v1287_v61 = vmax.f32 %v1285_v34, %v1286_v33  ;;  %v1832_v33 = vsel %vm710_vm2, %v4443_v32, -inf }
 0x583   : > { %v823_v3 = vmul.f32 1.442695, %v816_v56 }
 0x584   : > { %v1856_v14 = vsub.f32 %v1807_v36, %v1845_v6  ;;  %v1850_v15 = vmax.f32 %v1848_v4, %v1849_v11  ;;  %v1298_v36 = vrot.slane %v1297_v28, 2  ;;  %v1316_v5 = vsub.f32 %v4365_v45, %v1287_v61 }
 0x586   : > { %v1864_v27 = vmul.f32 1.442695, %v1856_v14  ;;  %v1851_v22 = vrot.slane %v1850_v15, 1  ;;  %v1299_v46 = vmax.f32 %v1297_v28, %v1298_v36  ;;  %v1321_v12 = vmul.f32 1.442695, %v1316_v5 }
 0x588   : > { %3626 = vpow2.f32 %v1864_v27  ;;  %v1852_v30 = vmax.f32 %v1850_v15, %v1851_v22  ;;  %v1300_v62 = vrot.slane %v1299_v46, 1 }
 0x58a   : > { %v3625_v50 = vpop.eup %3624  ;;  %v1857_v37 = vsub.f32 %v1812_v55, %v1852_v30  ;;  %v841_v55 = vrot.slane %v840_v44, 1  ;;  %v1301_v6 = vmax.f32 %v1299_v46, %v1300_v62 }
 0x58b   : > { %v1875_v29 = vsel %vm710_vm2, %v3625_v50, 0.0 }
 0x58c   : > { %v1876_v31 = vrot.slane %v1875_v29, 4  ;;  %v1866_v53 = vmul.f32 1.442695, %v1857_v37  ;;  %v842_v7 = vadd.f32 %v841_v55, %v840_v44  ;;  %v1318_v59 = vsub.f32 %v4369_v51, %v1301_v6 }
 0x58d   : > { %v1818_v37 = vsel %vm710_vm2, %v4439_v23, -inf }
 0x58e   : > { %v1877_v1 = vadd.f32 %v1876_v31, %v1875_v29  ;;  %3628 = vpow2.f32 %v1866_v53  ;;  %v1325_v17 = vmul.f32 1.442695, %v1318_v59  ;;  %v1819_v40 = vrot.slane %v1818_v37, 4 }
 0x58f   : > { %v1833_v53 = vrot.slane %v1832_v33, 4 }
 0x590   : > { %v1878_v39 = vrot.slane %v1877_v1, 2 }
 0x591   : > { %v1834_v61 = vmax.f32 %v1832_v33, %v1833_v53 }
 0x592   : > { %v3627_v41 = vpop.eup %3626  ;;  %v1879_v57 = vadd.f32 %v1878_v39, %v1877_v1 }
 0x593   : > { %v1889_v48 = vsel %vm710_vm2, %v3627_v41, 0.0 }
 0x594   : > { %v1890_v13 = vrot.slane %v1889_v48, 4  ;;  %v1880_v54 = vrot.slane %v1879_v57, 1 }
 0x596   : > { %v1891_v58 = vadd.f32 %v1890_v13, %v1889_v48  ;;  %v1881_v60 = vadd.f32 %v1880_v54, %v1879_v57  ;;  %v1820_v48 = vmax.f32 %v1818_v37, %v1819_v40 }
 0x598   : > { %v1892_v2 = vrot.slane %v1891_v58, 2  ;;  %3630 = vrcp.f32 %v1881_v60  ;;  %v4462_v14 = vpop.eup %3628  ;;  %v1821_v60 = vrot.slane %v1820_v48, 2 }
 0x599   : > { %3632 = vpow2.f32 %v823_v3  ;;  %v1896_v27 = vsel %vm710_vm2, %v4462_v14, 0.0  ;;  %v1835_v3 = vrot.slane %v1834_v61, 2 }
 0x59a   : > { %v1893_v4 = vadd.f32 %v1892_v2, %v1891_v58  ;;  %3634 = vrcp.f32 %v842_v7  ;;  %v1897_v20 = vrot.slane %v1896_v27, 4  ;;  %v1822_v2 = vmax.f32 %v1820_v48, %v1821_v60 }
 0x59c   : > { %v1894_v10 = vrot.slane %v1893_v4, 1  ;;  %v1898_v25 = vadd.f32 %v1897_v20, %v1896_v27  ;;  %v1823_v7 = vrot.slane %v1822_v2, 1 }
 0x59e   : > { %v1895_v11 = vadd.f32 %v1894_v10, %v1893_v4  ;;  %v1899_v31 = vrot.slane %v1898_v25, 2  ;;  %v1836_v10 = vmax.f32 %v1834_v61, %v1835_v3 }
 0x5a0   : > { %3636 = vrcp.f32 %v1895_v11  ;;  %v1900_v39 = vadd.f32 %v1899_v31, %v1898_v25 }
 0x5a1   : > { %3638 = vpow2.f32 %v1321_v12 }
 0x5a2   : > { %v3631_v15 = vpop.eup %3630  ;;  %3640 = vpow2.f32 %v1325_v17  ;;  %v1901_v46 = vrot.slane %v1900_v39, 1  ;;  %v1837_v17 = vrot.slane %v1836_v10, 1 }
 0x5a3   : > { %v1909_v18 = vmul.f32 %v3631_v15, %v3625_v50  ;;  %v4466_v21 = vpop.eup %3632  ;;  %v1824_v15 = vmax.f32 %v1822_v2, %v1823_v7 }
 0x5a4   : > { %v3635_v22 = vpop.eup %3634  ;;  %v843_v51 = vsel %vm710_vm2, %v4466_v21, 0.0  ;;  %v1902_v58 = vadd.f32 %v1901_v46, %v1900_v39  ;;  %v1838_v20 = vmax.f32 %v1836_v10, %v1837_v17 }
 0x5a5   : > { %v1914_v45 = vpack.c.bf16 %v1909_v18, %v1909_v18  ;;  %v870_v50 = vmul.f32 %v3635_v22, %v4449_v63  ;;  %v844_v30 = vrot.slane %v843_v51, 4 }
 0x5a6   : > { %3642 = vrcp.f32 %v1902_v58  ;;  %v1855_v25 = vsub.f32 %v4443_v32, %v1838_v20 }
 0x5a7   : > { %1982 = vxpose.xlu0.c.b16.start.end [1/1] (short) (narrow) %v1914_v45, 16  ;;  %v875_v1 = vpack.c.bf16 %v870_v50, %v870_v50  ;;  %v845_v34 = vadd.f32 %v844_v30, %v843_v51  ;;  %v1853_v45 = vsub.f32 %v4439_v23, %v1824_v15 }
 0x5a8   : > { %v1862_v50 = vmul.f32 1.442695, %v1855_v25 }
 0x5a9   : > { %v1858_v51 = vmul.f32 1.442695, %v1853_v45 }
 0x5aa   : > { %v3637_v24 = vpop.eup %3636 }
 0x5ab   : > { %v1911_v26 = vmul.f32 %v3637_v24, %v3627_v41  ;;  %v4470_v28 = vpop.eup %3638  ;;  %v846_v41 = vrot.slane %v845_v34, 2 }
 0x5ac   : > { %v1331_v47 = vsel %vm710_vm2, %v4470_v28, 0.0  ;;  %v3641_v16 = vpop.eup %3640 }
 0x5ad   : > { %v1916_v29 = vpack.c.bf16 %v1911_v26, %v1911_v26  ;;  %v1332_v36 = vrot.slane %v1331_v47, 4  ;;  %v1345_v63 = vsel %vm710_vm2, %v3641_v16, 0.0  ;;  %v847_v13 = vadd.f32 %v846_v41, %v845_v34 }
 0x5ae   : > { %v1346_v44 = vrot.slane %v1345_v63, 4  ;;  %v681_v34 = vadd.f32 %v4294_v42, %v4296_v43 }
 0x5af   : > { %2110 = vxpose.xlu1.c.b16.start.end [1/1] (short) (narrow) %v1916_v29, 16  ;;  %v1333_v57 = vadd.f32 %v1332_v36, %v1331_v47  ;;  %v848_v62 = vrot.slane %v847_v13, 1 }
 0x5b0   : > { %2190 = vrot.lane.b32.xlu0 %v4401_v38, %s3910_s23  ;;  %v1347_v56 = vadd.f32 %v1346_v44, %v1345_v63  ;;  %v3643_v59 = vpop.eup %3642  ;;  %v3153_v37 = vpack.c.bf16 %v681_v34, %v681_v34 }
 0x5b1   : > { %v1334_v54 = vrot.slane %v1333_v57, 2  ;;  %v849_v4 = vadd.f32 %v848_v62, %v847_v13  ;;  %v1912_v27 = vmul.f32 %v3643_v59, %v4462_v14  ;;  %v2286_v13 = vpop.permute.xlu1 %2285 }
 0x5b2   : > { %v1024_v3 = vsel %vm898_vm3, %v3153_v37, 0 }
 0x5b3   : > { %942 = vxpose.xlu1.c.b16.start.end [1/1] (short) (narrow) %v875_v1, 16  ;;  %v1335_v55 = vadd.f32 %v1334_v54, %v1333_v57  ;;  %3644 = vrcp.f32 %v849_v4  ;;  %v1917_v22 = vpack.c.bf16 %v1912_v27, %v1912_v27  ;;  %v1148_v4 = vsel %vm898_vm3, %v4401_v38, 0 }
 0x5b4   : > { %2535 = vrot.lane.b32.xlu0 %v4399_v35, %s3911_s28  ;;  %v1348_v35 = vrot.slane %v1347_v56, 2 }
 0x5b5   : > { %v1336_v5 = vrot.slane %v1335_v55, 1  ;;  %v2280_v61 = vpop.permute.xlu1 %2279 }
 0x5b6   : > { %v1349_v6 = vadd.f32 %v1348_v35, %v1347_v56 }
 0x5b7   : > { %1397 = vrot.lane.b32.xlu1 %v4320_v52, %s3909_s11  ;;  %v1337_v11 = vadd.f32 %v1336_v5, %v1335_v55  ;;  %v2297_v55 = vsel %vm710_vm2, %v2286_v13, 0  ;;  %v1136_v5 = vpop.trf.xlu0 }
 0x5b8   : > { %v1350_v12 = vrot.slane %v1349_v6, 1 }
 0x5b9   : > { %3646 = vrcp.f32 %v1337_v11 }
 0x5ba   : > { %v1351_v18 = vadd.f32 %v1350_v12, %v1349_v6 }
 0x5bc   : > { %3648 = vrcp.f32 %v1351_v18 }
 0x5bd   : > { %v3645_v24 = vpop.eup %3644  ;;  %3650 = vpow2.f32 %v1858_v51 }
 0x5be   : > { %v871_v26 = vmul.f32 %v3645_v24, %v4466_v21  ;;  %3652 = vpow2.f32 %v1862_v50 }
 0x5c0   : > { %v876_v30 = vpack.c.bf16 %v871_v26, %v871_v26 }
 0x5c3   : > { %v3647_v29 = vpop.eup %3646 }
 0x5c4   : > { %v1371_v31 = vmul.f32 %v3647_v29, %v4470_v28 }
 0x5c6   : > { %v3649_v47 = vpop.eup %3648  ;;  %v1376_v23 = vpack.c.bf16 %v1371_v31, %v1371_v31 }
 0x5c7   : > { %v1373_v14 = vmul.f32 %v3649_v47, %v3641_v16  ;;  %v3651_v1 = vpop.eup %3650 }
 0x5c8   : > { %v1868_v21 = vsel %vm710_vm2, %v3651_v1, 0.0  ;;  %v3653_v36 = vpop.eup %3652 }
 0x5c9   : > { %v1378_v32 = vpack.c.bf16 %v1373_v14, %v1373_v14  ;;  %v1869_v39 = vrot.slane %v1868_v21, 4  ;;  %v1882_v28 = vsel %vm710_vm2, %v3653_v36, 0.0 }
 0x5ca   : > { %v1883_v41 = vrot.slane %v1882_v28, 4 }
 0x5cb   : > { %v1870_v63 = vadd.f32 %v1869_v39, %v1868_v21 }
 0x5cc   : > { %v1884_v40 = vadd.f32 %v1883_v41, %v1882_v28 }
 0x5cd   : > { %v1871_v16 = vrot.slane %v1870_v63, 2 }
 0x5ce   : > { %v1885_v43 = vrot.slane %v1884_v40, 2 }
 0x5cf   : > { %v1872_v42 = vadd.f32 %v1871_v16, %v1870_v63 }
 0x5d0   : > { %v1886_v44 = vadd.f32 %v1885_v43, %v1884_v40 }
 0x5d1   : > { %v1873_v57 = vrot.slane %v1872_v42, 1 }
 0x5d2   : > { %2174 = vxpose.xlu0.c.b16.start.end [1/1] (short) (narrow) %v1917_v22, 16  ;;  %v1887_v46 = vrot.slane %v1886_v44, 1 }
 0x5d3   : > { %v1874_v33 = vadd.f32 %v1873_v57, %v1872_v42 }
 0x5d4   : > { %v1888_v48 = vadd.f32 %v1887_v46, %v1886_v44 }
 0x5d5   : > { %3654 = vrcp.f32 %v1874_v33 }
 0x5d6   : > { %3656 = vrcp.f32 %v1888_v48 }
 0x5da   : > { %1004 = vxpose.xlu1.c.b16.start.end [1/1] (short) (narrow) %v876_v30, 16 }
 0x5de   : > { %1381 = vxpose.xlu1.c.b16.start.end [1/1] (short) (narrow) %v1376_v23, 16 }
 0x5df   : > { %v3655_v53 = vpop.eup %3654 }
 0x5e0   : > { %v1908_v54 = vmul.f32 %v3655_v53, %v3651_v1  ;;  %v3657_v56 = vpop.eup %3656 }
 0x5e1   : > { %v1910_v60 = vmul.f32 %v3657_v56, %v3653_v36 }
 0x5e2   : > { %1509 = vxpose.xlu1.c.b16.start.end [1/1] (short) (narrow) %v1378_v32, 16  ;;  %v1913_v58 = vpack.c.bf16 %v1908_v54, %v1908_v54 }
 0x5e3   : > { %v1915_v35 = vpack.c.bf16 %v1910_v60, %v1910_v60 }
 0x5e6   : > { %1525 = vrot.lane.b32.xlu1 %v3153_v37, %s3909_s11  ;;  %s3171_s11 = smul.u32 640, %s3993_s17  ;;  %s3915_s17 = smov [#allocation12]  }
 0x5e7   : > { %s3824_s26 = sshll.u32 %s3915_s17, 4  ;;  %s3825_s26 = int_to_ptr.vmem [resolvable:$false] %s3824_s26 }
 0x5e8   : > { %s3826_s22 = scalar_lea.vmem %s3825_s26, 1280  ;;  %p3827_p2 = scmp.lt.s32.totalorder %s4675_s30, %s3825_s26 }
 0x5ea   : > { %1934 = vrot.lane.b32.xlu1 %v4320_v52, %s3910_s23 }
 0x5ee   : > { %2062 = vrot.lane.b32.xlu1 %v3153_v37, %s3910_s23  ;;  %s4767_s23 = sld [smem:[#allocation21_spill]] }
 0x611   : > { %1918 = vxpose.xlu1.c.b16.start.end [1/1] (short) (narrow) %v1913_v58, 16 }
 0x615   : > { %2046 = vxpose.xlu1.c.b16.start.end [1/1] (short) (narrow) %v1915_v35, 16  ;;  %v2118_v62 = vpop.trf.xlu1 }
 0x616   : > { %3409 = vmatmul.mubr.msk.bf16.vlgmr.msra.gmra.mrb[52].mxu1 %vm710_vm2, %v2118_v62 }
 0x617   : > { %3419 = vmatpush3.bf16.xpose.msra.mxu1 %v2297_v55  ;;  %3420 = vmatprep.mubr.msk.bf16.mxu1 %vm3908_vm0, %v3907_v0 }
 0x618   : > { %3450 = vmatprep.subr.bf16.mxu1 %v3907_v0 }
 0x619   : > { %2471 = vrot.lane.b32.xlu1 %v4320_v52, %s3911_s28  ;;  %v950_v2 = vpop.trf.xlu1 }
 0x61a   : > { %3309 = vmatmul.mubr.msk.bf16.vlgmr.msra.gmra.mrb[24].mxu0 %vm710_vm2, %v950_v2 }
 0x61b   : > { %3313 = vmatpush3.bf16.msra.mxu0 %v1024_v3  ;;  %3314 = vmatprep.mubr.msk.bf16.mxu0 %vm3908_vm0, %v3907_v0 }
 0x61c   : > { %3324 = vmatprep.subr.bf16.mxu0 %v3907_v0 }
 0x61d   : > { %2599 = vrot.lane.b32.xlu1 %v3153_v37, %s3911_s28 }
 0x61e   : > { %3421 = vmatmul.mubr.msk.bf16.vlgmr.msra.gmra.mrb[56].mxu1 %vm710_vm2, %v2280_v61 }
 0x61f   : > { %3424 = vmatprep.mubr.msk.bf16.mxu1 %vm3908_vm0, %v3907_v0 }
 0x621   : > { %2663 = vrot.lane.b32.xlu1 %v4301_v49, %s3911_s28 }
 0x625   : > { %2727 = vrot.lane.b32.xlu1 %v4401_v38, %s3911_s28  ;;  %s4680_s28 = scalar_lea.hbm %s4767_s23, %s3171_s11 }
 0x626   : > { %3425 = vmatmul.mubr.msk.bf16.gmra.mrb[60].mxu1 %vm710_vm2, %v4425_v8  ;;  %v1462_v8 = vpop.permute.xlu0 %1461 }
 0x627   : > { %3428 = vmatprep.mubr.msk.bf16.mxu1 %vm3908_vm0, %v3907_v0  ;;  %v1467_v7 = vsel %vm898_vm3, %v1462_v8, 0 }
 0x629   : > { %v1398_v52 = vpop.permute.xlu1 %1397 }
 0x62a   : > { %v1654_v6 = vpop.permute.xlu0 %1653 }
 0x62b   : > { %v1659_v17 = vsel %vm898_vm3, %v1654_v6, 0 }
 0x62e   : > { %3429 = vmatmul.mubr.msk.bf16.gmra.mrb[64].mxu1 %vm710_vm2, %v4427_v9  ;;  %v1403_v9 = vsel %vm898_vm3, %v1398_v52, 0  ;;  %v1999_v11 = vpop.permute.xlu0 %1998 }
 0x62f   : > { %3452 = vmatprep.mubr.msk.bf16.mxu1 %vm3908_vm0, %v3907_v0  ;;  %v2004_v24 = vsel %vm898_vm3, %v1999_v11, 0 }
 0x632   : > { %v1453_v12 = vpop.trf.xlu0 }
 0x636   : > { %v1645_v27 = vpop.trf.xlu0 }
 0x63a   : > { %v1990_v51 = vpop.trf.xlu0 }
 0x63e   : > { %v2191_v26 = vpop.permute.xlu0 %2190 }
 0x63f   : > { %v2196_v50 = vsel %vm898_vm3, %v2191_v26, 0 }
 0x640   : > { %v1012_v49 = vpop.trf.xlu1 }
 0x641   : > { %3315 = vmatmul.mubr.msk.bf16.vlgmr.msra.gmra.mrb[28].mxu0 %vm710_vm2, %v1012_v49 }
 0x642   : > { %3325 = vmatpush3.bf16.msra.mxu0 %v1148_v4  ;;  %3326 = vmatprep.mubr.msk.bf16.mxu0 %vm3908_vm0, %v3907_v0  ;;  %v4570_v30 = vpop.permute.xlu0 %2535 }
 0x643   : > { %3344 = vmatprep.subr.bf16.mxu0 %v3907_v0 }
 0x644   : > { %v1389_v38 = vpop.trf.xlu1 }
 0x646   : > { %v2182_v47 = vpop.trf.xlu0 }
 0x648   : > { %v1517_v10 = vpop.trf.xlu1 }
 0x649   : > { %3327 = vmatmul.mubr.msk.bf16.vlgmr.msra.gmra.mrb[32].mxu0 %vm710_vm2, %v1136_v5 }
 0x64a   : > { %3345 = vmatpush3.bf16.msra.mxu0 %v1403_v9  ;;  %3346 = vmatprep.mubr.msk.bf16.mxu0 %vm3908_vm0, %v3907_v0 }
 0x64b   : > { %3350 = vmatprep.subr.bf16.mxu0 %v3907_v0 }
 0x651   : > { %3347 = vmatmul.mubr.msk.bf16.vlgmr.msra.gmra.mrb[36].mxu0 %vm710_vm2, %v1389_v38 }
 0x652   : > { %3351 = vmatpush3.bf16.msra.mxu0 %v1467_v7  ;;  %3352 = vmatprep.mubr.msk.bf16.mxu0 %vm3908_vm0, %v3907_v0 }
 0x653   : > { %3356 = vmatprep.subr.bf16.mxu0 %v3907_v0 }
 0x658   : > { %v1526_v59 = vpop.permute.xlu1 %1525 }
 0x659   : > { %v1531_v15 = vsel %vm898_vm3, %v1526_v59, 0  ;;  %3353 = vmatmul.mubr.msk.bf16.vlgmr.msra.gmra.mrb[40].mxu0 %vm710_vm2, %v1453_v12 }
 0x65a   : > { %3357 = vmatpush3.bf16.msra.mxu0 %v1531_v15  ;;  %3358 = vmatprep.mubr.msk.bf16.mxu0 %vm3908_vm0, %v3907_v0 }
 0x65b   : > { %3368 = vmatprep.subr.bf16.mxu0 %v3907_v0 }
 0x65c   : > { %v1935_v18 = vpop.permute.xlu1 %1934 }
 0x65d   : > { %v1940_v45 = vsel %vm898_vm3, %v1935_v18, 0 }
 0x660   : > { %v2063_v20 = vpop.permute.xlu1 %2062 }
 0x661   : > { %3359 = vmatmul.mubr.msk.bf16.vlgmr.msra.gmra.mrb[44].mxu0 %vm710_vm2, %v1517_v10  ;;  %v2068_v25 = vsel %vm898_vm3, %v2063_v20, 0 }
 0x662   : > { %3369 = vmatpush3.bf16.msra.mxu0 %v1659_v17  ;;  %3370 = vmatprep.mubr.msk.bf16.mxu0 %vm3908_vm0, %v3907_v0 }
 0x663   : > { %3388 = vmatprep.subr.bf16.mxu0 %v3907_v0 }
 0x669   : > { %3371 = vmatmul.mubr.msk.bf16.vlgmr.msra.gmra.mrb[48].mxu0 %vm710_vm2, %v1645_v27 }
 0x66a   : > { %3389 = vmatpush3.bf16.msra.mxu0 %v1940_v45  ;;  %3390 = vmatprep.mubr.msk.bf16.mxu0 %vm3908_vm0, %v3907_v0 }
 0x66b   : > { %3394 = vmatprep.subr.bf16.mxu0 %v3907_v0 }
 0x677   : > { %v1926_v22 = vpop.trf.xlu1 }
 0x678   : > { %3391 = vmatmul.mubr.msk.bf16.vlgmr.msra.gmra.mrb[52].mxu0 %vm710_vm2, %v1926_v22 }
 0x679   : > { %3395 = vmatpush3.bf16.msra.mxu0 %v2004_v24  ;;  %3396 = vmatprep.mubr.msk.bf16.mxu0 %vm3908_vm0, %v3907_v0 }
 0x67a   : > { %3400 = vmatprep.subr.bf16.mxu0 %v3907_v0 }
 0x67b   : > { %v2054_v29 = vpop.trf.xlu1 }
 0x680   : > { %3397 = vmatmul.mubr.msk.bf16.vlgmr.msra.gmra.mrb[56].mxu0 %vm710_vm2, %v1990_v51 }
 0x681   : > { %3401 = vmatpush3.bf16.msra.mxu0 %v2068_v25  ;;  %3402 = vmatprep.mubr.msk.bf16.mxu0 %vm3908_vm0, %v3907_v0 }
 0x682   : > { %3412 = vmatprep.subr.bf16.mxu0 %v3907_v0 }
 0x688   : > { %3403 = vmatmul.mubr.msk.bf16.vlgmr.msra.gmra.mrb[60].mxu0 %vm710_vm2, %v2054_v29 }
 0x689   : > { %3413 = vmatpush3.bf16.msra.mxu0 %v2196_v50  ;;  %3414 = vmatprep.mubr.msk.bf16.mxu0 %vm3908_vm0, %v3907_v0 }
 0x68a   : > { %3432 = vmatprep.subr.bf16.mxu0 %v3907_v0 }
 0x68b   : > { %v2472_v31 = vpop.permute.xlu1 %2471 }
 0x68c   : > { %v2477_v14 = vsel %vm898_vm3, %v2472_v31, 0 }
 0x68f   : > { %v4575_v23 = vpop.permute.xlu1 %2599 }
 0x690   : > { %3415 = vmatmul.mubr.msk.bf16.vlgmr.msra.gmra.mrb[64].mxu0 %vm710_vm2, %v2182_v47 }
 0x691   : > { %3433 = vmatpush3.bf16.msra.mxu0 %v2477_v14  ;;  %3434 = vmatprep.mubr.msk.bf16.mxu0 %vm3908_vm0, %v3907_v0 }
 0x692   : > { %3438 = vmatprep.subr.bf16.mxu0 %v3907_v0 }
 0x693   : > { %v2664_v1 = vpop.permute.xlu1 %2663 }
 0x694   : > { %v2669_v34 = vsel %vm898_vm3, %v2664_v1, 0 }
 0x695   : > { %3451 = vmatpush3.bf16.msra.mxu1 %v2669_v34 }
 0x696   : > { %3462 = vmatprep.subr.bf16.mxu1 %v3907_v0 }
 0x6e9   : > { %v4584_v32 = vpop.f32.mrb[52].mxu1 }
 0x6ea   : > { %v3410_v21 = vpop.f32.mrb[53].mxu1 }
 0x6eb   : > { %v2171_v36 = vpop.f32.mrb[54].mxu1 }
 0x6ec   : > { %v3411_v37 = vpop.f32.mrb[55].mxu1 }
 0x6f1   : > { %v2333_v39 = vpop.f32.mrb[56].mxu1 }
 0x6f2   : > { %v2355_v28 = vsel %vm710_vm2, %v2333_v39, -inf  ;;  %v3422_v63 = vpop.f32.mrb[57].mxu1 }
 0x6f3   : > { %v2356_v41 = vrot.slane %v2355_v28, 4  ;;  %v2336_v16 = vpop.f32.mrb[58].mxu1 }
 0x6f4   : > { %v2362_v40 = vsel %vm710_vm2, %v2336_v16, -inf  ;;  %v3423_v42 = vpop.f32.mrb[59].mxu1 }
 0x6f5   : > { %v2357_v43 = vmax.f32 %v2355_v28, %v2356_v41  ;;  %v2363_v57 = vrot.slane %v2362_v40, 4 }
 0x6f7   : > { %v2358_v44 = vrot.slane %v2357_v43, 2  ;;  %v2364_v33 = vmax.f32 %v2362_v40, %v2363_v57 }
 0x6f9   : > { %v2359_v46 = vmax.f32 %v2357_v43, %v2358_v44  ;;  %v2365_v48 = vrot.slane %v2364_v33, 2  ;;  %v2341_v53 = vpop.f32.mrb[60].mxu1 }
 0x6fa   : > { %v2369_v13 = vsel %vm710_vm2, %v2341_v53, -inf  ;;  %v3426_v54 = vpop.f32.mrb[61].mxu1 }
 0x6fb   : > { %v2360_v56 = vrot.slane %v2359_v46, 1  ;;  %v2366_v58 = vmax.f32 %v2364_v33, %v2365_v48  ;;  %v2370_v60 = vrot.slane %v2369_v13, 4  ;;  %v2344_v61 = vpop.f32.mrb[62].mxu1 }
 0x6fc   : > { %v2376_v35 = vsel %vm710_vm2, %v2344_v61, -inf  ;;  %v3427_v62 = vpop.f32.mrb[63].mxu1 }
 0x6fd   : > { %v2361_v55 = vmax.f32 %v2359_v46, %v2360_v56  ;;  %v2367_v2 = vrot.slane %v2366_v58, 1  ;;  %v2371_v3 = vmax.f32 %v2369_v13, %v2370_v60  ;;  %v2377_v52 = vrot.slane %v2376_v35, 4 }
 0x6ff   : > { %v2390_v4 = vsub.f32 %v2333_v39, %v2361_v55  ;;  %v2368_v49 = vmax.f32 %v2366_v58, %v2367_v2  ;;  %v2372_v5 = vrot.slane %v2371_v3, 2  ;;  %v2378_v8 = vmax.f32 %v2376_v35, %v2377_v52 }
 0x701   : > { %v2395_v9 = vmul.f32 1.442695, %v2390_v4  ;;  %v2391_v38 = vsub.f32 %v2336_v16, %v2368_v49  ;;  %v2373_v6 = vmax.f32 %v2371_v3, %v2372_v5  ;;  %v2379_v7 = vrot.slane %v2378_v8, 2  ;;  %v2349_v10 = vpop.f32.mrb[64].mxu1 }
 0x702   : > { %v2383_v11 = vsel %vm710_vm2, %v2349_v10, -inf  ;;  %v3430_v12 = vpop.f32.mrb[65].mxu1 }
 0x703   : > { %3658 = vpow2.f32 %v2395_v9  ;;  %v2397_v59 = vmul.f32 1.442695, %v2391_v38  ;;  %v2374_v15 = vrot.slane %v2373_v6, 1  ;;  %v2380_v17 = vmax.f32 %v2378_v8, %v2379_v7  ;;  %v2352_v18 = vpop.f32.mrb[66].mxu1 }
 0x704   : > { %v2384_v27 = vrot.slane %v2383_v11, 4  ;;  %v3431_v45 = vpop.f32.mrb[67].mxu1 }
 0x705   : > { %3660 = vpow2.f32 %v2397_v59  ;;  %v2375_v20 = vmax.f32 %v2373_v6, %v2374_v15  ;;  %v2381_v22 = vrot.slane %v2380_v17, 1  ;;  %v936_v45 = vpop.f32.mrb[20].mxu0 }
 0x706   : > { %v2385_v24 = vmax.f32 %v2383_v11, %v2384_v27 }
 0x707   : > { %v2392_v51 = vsub.f32 %v2341_v53, %v2375_v20  ;;  %v2382_v25 = vmax.f32 %v2380_v17, %v2381_v22  ;;  %v1190_v22 = vpack.c.bf16 %v936_v45, %v936_v45 }
 0x708   : > { %v2386_v26 = vrot.slane %v2385_v24, 2 }
 0x709   : > { %v2399_v29 = vmul.f32 1.442695, %v2392_v51  ;;  %v2393_v50 = vsub.f32 %v2344_v61, %v2382_v25  ;;  %1196 = vst.msk [vmem:[#allocation2] sm:$0xf] %vm1195_vm4, %v1190_v22 }
 0x70a   : > { %v2387_v31 = vmax.f32 %v2385_v24, %v2386_v26  ;;  %v3304_v24 = vpop.f32.mrb[21].mxu0 }
 0x70b   : > { %3662 = vpow2.f32 %v2399_v29  ;;  %v2401_v47 = vmul.f32 1.442695, %v2393_v50  ;;  %v939_v51 = vpop.f32.mrb[22].mxu0 }
 0x70c   : > { %v2388_v14 = vrot.slane %v2387_v31, 1  ;;  %v3305_v26 = vpop.f32.mrb[23].mxu0 }
 0x70d   : > { %v3659_v1 = vpop.eup %3658  ;;  %3664 = vpow2.f32 %v2401_v47  ;;  %v998_v50 = vpop.f32.mrb[24].mxu0 }
 0x70e   : > { %v2405_v34 = vsel %vm710_vm2, %v3659_v1, 0.0  ;;  %v2389_v21 = vmax.f32 %v2387_v31, %v2388_v14  ;;  %v1191_v47 = vpack.c.bf16 %v998_v50, %v998_v50  ;;  %v3310_v14 = vpop.f32.mrb[25].mxu0 }
 0x70f   : > { %v3661_v36 = vpop.eup %3660  ;;  %v2406_v37 = vrot.slane %v2405_v34, 4 }
 0x710   : > { %v2412_v39 = vsel %vm710_vm2, %v3661_v36, 0.0  ;;  %v2394_v28 = vsub.f32 %v2349_v10, %v2389_v21  ;;  %1197 = vst.msk [vmem:[#allocation2 + $0x4] sm:$0xf] %vm1195_vm4, %v1191_v47  ;;  %v2541_v47 = vsel %vm898_vm3, %v4570_v30, 0 }
 0x711   : > { %v2407_v63 = vadd.f32 %v2406_v37, %v2405_v34  ;;  %v2413_v41 = vrot.slane %v2412_v39, 4  ;;  %v1001_v34 = vpop.f32.mrb[26].mxu0 }
 0x712   : > { %v2403_v16 = vmul.f32 1.442695, %v2394_v28  ;;  %v3311_v37 = vpop.f32.mrb[27].mxu0  ;;  %v2728_v34 = vpop.permute.xlu1 %2727 }
 0x713   : > { %v2408_v40 = vrot.slane %v2407_v63, 2  ;;  %v2414_v42 = vadd.f32 %v2413_v41, %v2412_v39 }
 0x714   : > { %3666 = vpow2.f32 %v2403_v16  ;;  %v1060_v39 = vpop.f32.mrb[28].mxu0 }
 0x715   : > { %v3663_v43 = vpop.eup %3662  ;;  %v2415_v57 = vrot.slane %v2414_v42, 2  ;;  %v2409_v44 = vadd.f32 %v2408_v40, %v2407_v63  ;;  %v1192_v63 = vpack.c.bf16 %v1060_v39, %v1060_v39  ;;  %v3316_v41 = vpop.f32.mrb[29].mxu0  ;;  %v3159_v40 = vpack.c.bf16 %v4437_v19, %v4437_v19 }
 0x716   : > { %v2419_v33 = vsel %vm710_vm2, %v3663_v43, 0.0  ;;  %v1063_v16 = vpop.f32.mrb[30].mxu0 }
 0x717   : > { %v3665_v46 = vpop.eup %3664  ;;  %v2420_v48 = vrot.slane %v2419_v33, 4  ;;  %v2410_v53 = vrot.slane %v2409_v44, 1  ;;  %v2416_v13 = vadd.f32 %v2415_v57, %v2414_v42  ;;  %1198 = vst.msk [vmem:[#allocation2 + $0x8] sm:$0xf] %vm1195_vm4, %v1192_v63  ;;  %v3317_v42 = vpop.f32.mrb[31].mxu0 }
 0x718   : > { %v2426_v54 = vsel %vm710_vm2, %v3665_v46, 0.0 }
 0x719   : > { %v2421_v56 = vadd.f32 %v2420_v48, %v2419_v33  ;;  %v2427_v58 = vrot.slane %v2426_v54, 4  ;;  %v2411_v60 = vadd.f32 %v2410_v53, %v2409_v44  ;;  %v2417_v61 = vrot.slane %v2416_v13, 1 }
 0x71b   : > { %v2422_v35 = vrot.slane %v2421_v56, 2  ;;  %v2428_v62 = vadd.f32 %v2427_v58, %v2426_v54  ;;  %3668 = vrcp.f32 %v2411_v60  ;;  %v2418_v55 = vadd.f32 %v2417_v61, %v2416_v13 }
 0x71d   : > { %v2423_v2 = vadd.f32 %v2422_v35, %v2421_v56  ;;  %v2429_v3 = vrot.slane %v2428_v62, 2  ;;  %3670 = vrcp.f32 %v2418_v55 }
 0x71e   : > { %v3667_v52 = vpop.eup %3666 }
 0x71f   : > { %v2433_v4 = vsel %vm710_vm2, %v3667_v52, 0.0  ;;  %v2424_v49 = vrot.slane %v2423_v2, 1  ;;  %v2430_v5 = vadd.f32 %v2429_v3, %v2428_v62 }
 0x720   : > { %v2434_v8 = vrot.slane %v2433_v4, 4 }
 0x721   : > { %v2425_v9 = vadd.f32 %v2424_v49, %v2423_v2  ;;  %v2431_v38 = vrot.slane %v2430_v5, 1 }
 0x722   : > { %v2435_v6 = vadd.f32 %v2434_v8, %v2433_v4 }
 0x723   : > { %3672 = vrcp.f32 %v2425_v9  ;;  %v2432_v7 = vadd.f32 %v2431_v38, %v2430_v5 }
 0x724   : > { %v2436_v10 = vrot.slane %v2435_v6, 2 }
 0x725   : > { %v3669_v11 = vpop.eup %3668  ;;  %3674 = vrcp.f32 %v2432_v7 }
 0x726   : > { %v2445_v12 = vmul.f32 %v3669_v11, %v3659_v1  ;;  %v2437_v59 = vadd.f32 %v2436_v10, %v2435_v6 }
 0x727   : > { %v3671_v15 = vpop.eup %3670 }
 0x728   : > { %v2450_v17 = vpack.c.bf16 %v2445_v12, %v2445_v12  ;;  %v2446_v18 = vmul.f32 %v3671_v15, %v3661_v36  ;;  %v2438_v27 = vrot.slane %v2437_v59, 1 }
 0x72a   : > { %2455 = vxpose.xlu0.c.b16.start.end [1/1] (short) (narrow) %v2450_v17, 16  ;;  %v2439_v20 = vadd.f32 %v2438_v27, %v2437_v59  ;;  %v2451_v25 = vpack.c.bf16 %v2446_v18, %v2446_v18 }
 0x72c   : > { %3676 = vrcp.f32 %v2439_v20 }
 0x72d   : > { %v3673_v29 = vpop.eup %3672 }
 0x72e   : > { %2519 = vxpose.xlu0.c.b16.start.end [1/1] (short) (narrow) %v2451_v25, 16  ;;  %v2447_v31 = vmul.f32 %v3673_v29, %v3663_v43  ;;  %v1184_v43 = vpop.f32.mrb[32].mxu0 }
 0x72f   : > { %v3675_v1 = vpop.eup %3674  ;;  %v1194_v44 = vpack.c.bf16 %v1184_v43, %v1184_v43  ;;  %v3328_v33 = vpop.f32.mrb[33].mxu0 }
 0x730   : > { %v2452_v21 = vpack.c.bf16 %v2447_v31, %v2447_v31  ;;  %v2448_v36 = vmul.f32 %v3675_v1, %v3665_v46  ;;  %v1187_v48 = vpop.f32.mrb[34].mxu0  ;;  %v2605_v1 = vsel %vm898_vm3, %v4575_v23, 0  ;;  %v3594_v33 = vld [vmem:[#allocation11 + $0x8] sm:$0xff]  }
 0x731   : > { %1200 = vst.msk [vmem:[#allocation2 + $0x10] sm:$0xf] %vm1195_vm4, %v1194_v44  ;;  %v3329_v53 = vpop.f32.mrb[35].mxu0 }
 0x732   : > { %2583 = vxpose.xlu1.c.b16.start.end [1/1] (short) (narrow) %v2452_v21, 16  ;;  %v2453_v28 = vpack.c.bf16 %v2448_v36, %v2448_v36  ;;  %v1439_v54 = vpop.f32.mrb[36].mxu0  ;;  %v2733_v36 = vsel %vm898_vm3, %v2728_v34, 0 }
 0x733   : > { %v3348_v56 = vpop.f32.mrb[37].mxu0  ;;  %v3156_v62 = vpack.c.bf16 %v1439_v54, %v1439_v54 }
 0x734   : > { %2647 = vxpose.xlu0.c.b16.start.end [1/1] (short) (narrow) %v2453_v28, 16  ;;  %v1442_v19 = vpop.f32.mrb[38].mxu0 }
 0x735   : > { %v3349_v58 = vpop.f32.mrb[39].mxu0 }
 0x736   : > { %v3677_v57 = vpop.eup %3676  ;;  %1727 = vrot.lane.b32.xlu1 %v3159_v40, %s3912_s18  ;;  %v1503_v60 = vpop.f32.mrb[40].mxu0  ;;  %v3593_v40 = vld [vmem:[#allocation11] sm:$0xff]  }
 0x737   : > { %v2449_v46 = vmul.f32 %v3677_v57, %v3667_v52  ;;  %v3354_v61 = vpop.f32.mrb[41].mxu0  ;;  %v3157_v49 = vpack.c.bf16 %v1503_v60, %v1503_v60 }
 0x738   : > { %v1506_v35 = vpop.f32.mrb[42].mxu0 }
 0x739   : > { %v2454_v13 = vpack.c.bf16 %v2449_v46, %v2449_v46  ;;  %v3355_v55 = vpop.f32.mrb[43].mxu0  ;;  %v3164_v35 = vpack.c.bf16 %v4584_v32, %v4584_v32 }
 0x73a   : > { %v1567_v2 = vpop.f32.mrb[44].mxu0 }
 0x73b   : > { %2711 = vxpose.xlu0.c.b16.start.end [1/1] (short) (narrow) %v2454_v13, 16  ;;  %v3360_v3 = vpop.f32.mrb[45].mxu0  ;;  %v3158_v27 = vpack.c.bf16 %v1567_v2, %v1567_v2 }
 0x73c   : > { %v1570_v4 = vpop.f32.mrb[46].mxu0 }
 0x73d   : > { %v3361_v52 = vpop.f32.mrb[47].mxu0 }
 0x73e   : > { %v4604_v5 = vpop.f32.mrb[48].mxu0 }
 0x73f   : > { %v3372_v8 = vpop.f32.mrb[49].mxu0 }
 0x740   : > { %v1698_v9 = vpop.f32.mrb[50].mxu0  ;;  %v3160_v8 = vpack.c.bf16 %v4604_v5, %v4604_v5 }
 0x741   : > { %v3373_v38 = vpop.f32.mrb[51].mxu0 }
 0x744   : > { %1721 = vrot.lane.b32.xlu0 %v3156_v62, %s3912_s18 }
 0x748   : > { %1723 = vrot.lane.b32.xlu0 %v3157_v49, %s3912_s18 }
 0x74b   : > { %v1976_v6 = vpop.f32.mrb[52].mxu0 }
 0x74c   : > { %v3161_v7 = vpack.c.bf16 %v1976_v6, %v1976_v6  ;;  %v3392_v10 = vpop.f32.mrb[53].mxu0 }
 0x74d   : > { %v1979_v11 = vpop.f32.mrb[54].mxu0 }
 0x74e   : > { %2258 = vrot.lane.b32.xlu0 %v3161_v7, %s3913_s19  ;;  %v3393_v12 = vpop.f32.mrb[55].mxu0 }
 0x753   : > { %v2040_v59 = vpop.f32.mrb[56].mxu0 }
 0x754   : > { %v3162_v15 = vpack.c.bf16 %v2040_v59, %v2040_v59  ;;  %v3398_v17 = vpop.f32.mrb[57].mxu0 }
 0x755   : > { %v2043_v18 = vpop.f32.mrb[58].mxu0 }
 0x756   : > { %2260 = vrot.lane.b32.xlu0 %v3162_v15, %s3913_s19  ;;  %v3399_v45 = vpop.f32.mrb[59].mxu0 }
 0x75a   : > { %1725 = vrot.lane.b32.xlu0 %v3158_v27, %s3912_s18 }
 0x75b   : > { %v2104_v20 = vpop.f32.mrb[60].mxu0 }
 0x75c   : > { %v3404_v22 = vpop.f32.mrb[61].mxu0  ;;  %v3163_v48 = vpack.c.bf16 %v2104_v20, %v2104_v20 }
 0x75d   : > { %v2107_v24 = vpop.f32.mrb[62].mxu0 }
 0x75e   : > { %v3405_v51 = vpop.f32.mrb[63].mxu0 }
 0x75f   : > { %v3138_v51 = vld [vmem:[%s4766_s13] ss:$0 sm:$0xff] }
 0x763   : > { %v4610_v25 = vpop.f32.mrb[64].mxu0 }
 0x764   : > { %v3416_v26 = vpop.f32.mrb[65].mxu0  ;;  %v3165_v9 = vpack.c.bf16 %v4610_v25, %v4610_v25 }
 0x765   : > { %v2235_v29 = vpop.f32.mrb[66].mxu0 }
 0x766   : > { %v3417_v50 = vpop.f32.mrb[67].mxu0 }
 0x790   : > { %v2463_v31 = vpop.trf.xlu0 }
 0x791   : > { %3435 = vmatmul.mubr.msk.bf16.vlgmr.msra.gmra.mrb[68].mxu0 %vm710_vm2, %v2463_v31 }
 0x792   : > { %3439 = vmatpush3.bf16.msra.mxu0 %v2541_v47  ;;  %3440 = vmatprep.mubr.msk.bf16.mxu0 %vm3908_vm0, %v3907_v0 }
 0x793   : > { %3444 = vmatprep.subr.bf16.mxu0 %v3907_v0 }
 0x794   : > { %v2527_v14 = vpop.trf.xlu0 }
 0x798   : > { %v2591_v30 = vpop.trf.xlu1 }
 0x799   : > { %3441 = vmatmul.mubr.msk.bf16.vlgmr.msra.gmra.mrb[72].mxu0 %vm710_vm2, %v2527_v14 }
 0x79a   : > { %3445 = vmatpush3.bf16.msra.mxu0 %v2605_v1  ;;  %v2655_v21 = vpop.trf.xlu0  ;;  %3446 = vmatprep.mubr.msk.bf16.mxu0 %vm3908_vm0, %v3907_v0 }
 0x79b   : > { %3456 = vmatprep.subr.bf16.mxu0 %v3907_v0  ;;  %3453 = vmatmul.mubr.msk.bf16.vlgmr.msra.gmra.mrb[68].mxu1 %vm710_vm2, %v2655_v21 }
 0x79c   : > { %3466 = vmatprep.mubr.msk.bf16.mxu1 %vm3908_vm0, %v3907_v0  ;;  %3463 = vmatpush3.bf16.msra.mxu1 %v3593_v40 }
 0x79d   : > { %3464 = vmatprep.subr.bf16.mxu1 %v3907_v0 }
 0x7a0   : > { %3465 = vmatpush3.bf16.msra.mxu1 %v3594_v33 }
 0x7a1   : > { %3447 = vmatmul.mubr.msk.bf16.vlgmr.msra.gmra.mrb[76].mxu0 %vm710_vm2, %v2591_v30  ;;  %v2719_v23 = vpop.trf.xlu0 }
 0x7a2   : > { %3457 = vmatpush3.bf16.msra.mxu0 %v2733_v36  ;;  %3458 = vmatprep.mubr.msk.bf16.mxu0 %vm3908_vm0, %v3907_v0 }
 0x7a8   : > { %v1728_v37 = vpop.permute.xlu1 %1727 }
 0x7a9   : > { %1740 = vst.msk [vmem:[#allocation2 + $0xc] sm:$0xf] %vm1736_vm5, %v1728_v37  ;;  %3459 = vmatmul.mubr.msk.bf16.vlgmr.msra.gmra.mrb[80].mxu0 %vm710_vm2, %v2719_v23 }
 0x7b6   : > { %v1722_v39 = vpop.permute.xlu0 %1721 }
 0x7b7   : > { %1737 = vst.msk [vmem:[#allocation2] sm:$0xf] %vm1736_vm5, %v1722_v39 }
 0x7ba   : > { %v1724_v28 = vpop.permute.xlu0 %1723 }
 0x7bb   : > { %1738 = vst.msk [vmem:[#allocation2 + $0x4] sm:$0xf] %vm1736_vm5, %v1724_v28 }
 0x7c0   : > { %v2259_v63 = vpop.permute.xlu0 %2258 }
 0x7c1   : > { %2274 = vst.msk [vmem:[#allocation2] sm:$0xf] %vm2273_vm6, %v2259_v63 }
 0x7c8   : > { %v2261_v41 = vpop.permute.xlu0 %2260 }
 0x7c9   : > { %2275 = vst.msk [vmem:[#allocation2 + $0x4] sm:$0xf] %vm2273_vm6, %v2261_v41 }
 0x7cc   : > { %v1726_v16 = vpop.permute.xlu0 %1725 }
 0x7cd   : > { %1739 = vst.msk [vmem:[#allocation2 + $0x8] sm:$0xf] %vm1736_vm5, %v1726_v16 }
 0x864   : > { %v2513_v42 = vpop.f32.mrb[68].mxu0 }
 0x865   : > { %v3166_v43 = vpack.c.bf16 %v2513_v42, %v2513_v42  ;;  %v3436_v57 = vpop.f32.mrb[69].mxu0 }
 0x866   : > { %v2516_v44 = vpop.f32.mrb[70].mxu0 }
 0x867   : > { %2795 = vrot.lane.b32.xlu0 %v3166_v43, %s3914_s21  ;;  %v3437_v46 = vpop.f32.mrb[71].mxu0 }
 0x86b   : > { %2262 = vrot.lane.b32.xlu0 %v3163_v48, %s3913_s19 }
 0x86c   : > { %v2577_v53 = vpop.f32.mrb[72].mxu0 }
 0x86d   : > { %v3167_v13 = vpack.c.bf16 %v2577_v53, %v2577_v53  ;;  %v3442_v54 = vpop.f32.mrb[73].mxu0 }
 0x86e   : > { %v2580_v56 = vpop.f32.mrb[74].mxu0  ;;  %v2705_v19 = vpop.f32.mrb[68].mxu1 }
 0x86f   : > { %2797 = vrot.lane.b32.xlu1 %v3167_v13, %s3914_s21  ;;  %v3443_v58 = vpop.f32.mrb[75].mxu0  ;;  %v3454_v60 = vpop.f32.mrb[69].mxu1  ;;  %v3169_v55 = vpack.c.bf16 %v2705_v19, %v2705_v19 }
 0x870   : > { %v2708_v61 = vpop.f32.mrb[70].mxu1 }
 0x871   : > { %v3455_v62 = vpop.f32.mrb[71].mxu1 }
 0x873   : > { %2264 = vrot.lane.b32.xlu1 %v3164_v35, %s3913_s19 }
 0x874   : > { %v2641_v2 = vpop.f32.mrb[76].mxu0 }
 0x875   : > { %v3168_v3 = vpack.c.bf16 %v2641_v2, %v2641_v2  ;;  %v3448_v4 = vpop.f32.mrb[77].mxu0 }
 0x876   : > { %v2644_v49 = vpop.f32.mrb[78].mxu0 }
 0x877   : > { %2801 = vrot.lane.b32.xlu1 %v3169_v55, %s3914_s21  ;;  %2799 = vrot.lane.b32.xlu0 %v3168_v3, %s3914_s21  ;;  %v3449_v52 = vpop.f32.mrb[79].mxu0 }
 0x87b   : > { %2266 = vrot.lane.b32.xlu1 %v3165_v9, %s3913_s19  ;;  %1729 = vrot.lane.b32.xlu0 %v3160_v8, %s3912_s18  ;;  %s2928_s19 = scalar_lea.sflag [#allocation5], %s4201_s29 }
 0x87c   : > { %v2769_v32 = vpop.f32.mrb[80].mxu0 }
 0x87d   : > { %v3170_v38 = vpack.c.bf16 %v2769_v32, %v2769_v32  ;;  %v3460_v6 = vpop.f32.mrb[81].mxu0 }
 0x87e   : > { %v2772_v7 = vpop.f32.mrb[82].mxu0 }
 0x87f   : > { %2803 = vrot.lane.b32.xlu0 %v3170_v38, %s3914_s21  ;;  %v3461_v10 = vpop.f32.mrb[83].mxu0  ;;  %s3820_s21 = scalar_lea.vmem %s4675_s30, 640 }
 0x880   : > { %p3821_p7 = scmp.ne.s32.totalorder %s4675_s30, %s3820_s21  ;;  %p3828_p13 = scmp.lt.s32.totalorder %s3826_s22, %s3820_s21 }
 0x882   : > { %p3822_p12 = pnand %p3821_p7, %p4140_p10  ;;  %p3829_p9 = por %p3828_p13, %p3827_p2 }
 0x884   : > { %p3823_p1 = pneg %p3822_p12 }
 0x886   : > { %p3830_p0 = pnand %p3829_p9, %p3823_p1 }
 0x8d9   : > { %v2796_v11 = vpop.permute.xlu0 %2795 }
 0x8da   : > { %2811 = vst.msk [vmem:[#allocation2] sm:$0xf] %vm2810_vm7, %v2796_v11 }
 0x8dd   : > { %v2263_v12 = vpop.permute.xlu0 %2262 }
 0x8de   : > { %2276 = vst.msk [vmem:[#allocation2 + $0x8] sm:$0xf] %vm2273_vm6, %v2263_v12 }
 0x8e1   : > { %v2798_v5 = vpop.permute.xlu1 %2797 }
 0x8e2   : > { %2812 = vst.msk [vmem:[#allocation2 + $0x4] sm:$0xf] %vm2810_vm7, %v2798_v5 }
 0x8e5   : > { %v2265_v59 = vpop.permute.xlu1 %2264 }
 0x8e6   : > { %2277 = vst.msk [vmem:[#allocation2 + $0xc] sm:$0xf] %vm2273_vm6, %v2265_v59 }
 0x8e9   : > { %v2802_v15 = vpop.permute.xlu1 %2801  ;;  %v2800_v17 = vpop.permute.xlu0 %2799  ;;  %v3595_v18 = vld [vmem:[#allocation2] sm:$0xff]  }
 0x8ea   : > { %2814 = vst.msk [vmem:[#allocation2 + $0xc] sm:$0xf] %vm2810_vm7, %v2802_v15  ;;  %2813 = vst.msk [vmem:[#allocation2 + $0x8] sm:$0xf] %vm2810_vm7, %v2800_v17  ;;  %3467 = vmatmul.mubr.msk.bf16.vlgmr.msra.gmra.mrb[72].mxu1 %vm461_vm1, %v3595_v18 }
 0x8eb   : > { %3470 = vmatprep.mubr.msk.bf16.mxu1 %vm3908_vm0, %v3907_v0 }
 0x8ed   : > { %v2267_v27 = vpop.permute.xlu1 %2266  ;;  %v1730_v45 = vpop.permute.xlu0 %1729 }
 0x8ee   : > { %1741 = vst.msk [vmem:[#allocation2 + $0x10] sm:$0xf] %vm1736_vm5, %v1730_v45 }
 0x8ef   : > { %2278 = vst.msk [vmem:[#allocation2 + $0x10] sm:$0xf] %vm2273_vm6, %v2267_v27 }
 0x8f1   : > { %v2804_v20 = vpop.permute.xlu0 %2803  ;;  %v3596_v22 = vld [vmem:[#allocation2 + $0x8] sm:$0xff]  }
 0x8f2   : > { %2815 = vst.msk [vmem:[#allocation2 + $0x10] sm:$0xf] %vm2810_vm7, %v2804_v20  ;;  %3471 = vmatmul.mubr.msk.bf16.gmra.mrb[76].mxu1 %vm461_vm1, %v3596_v22 }
 0x8f3   : > { %3474 = vmatprep.mubr.msk.bf16.mxu1 %vm3908_vm0, %v3907_v0 }
 0x8f9   : > { %v3597_v24 = vld [vmem:[#allocation2 + $0x10] ss:$0 sps:$4 sm:$0xff]  }
 0x8fa   : > { %3475 = vmatmul.mubr.msk.bf16.gmra.mrb[80].mxu1 %vm461_vm1, %v3597_v24 }
 0x9bd   : > { %v2900_v25 = vpop.f32.mrb[72].mxu1 }
 0x9be   : > { %v2901_v26 = vadd.f32 %v3138_v51, %v2900_v25  ;;  %v3468_v29 = vpop.f32.mrb[73].mxu1 }
 0x9bf   : > { %v2903_v50 = vpop.f32.mrb[74].mxu1 }
 0x9c0   : > { %2922 = vst [vmem:[%s433_s9] sm:$0xff] %v2901_v26  ;;  %v2904_v31 = vadd.f32 %v3138_v51, %v2903_v50  ;;  %v3469_v47 = vpop.f32.mrb[75].mxu1 }
 0x9c2   : > { %2923 = vst [vmem:[%s433_s9 + $0x8] sm:$0xff] %v2904_v31 }
 0x9c5   : > { %v2908_v14 = vpop.f32.mrb[76].mxu1 }
 0x9c6   : > { %v2909_v0 = vadd.f32 %v3138_v51, %v2908_v14  ;;  %v3472_v1 = vpop.f32.mrb[77].mxu1 }
 0x9c7   : > { %v2911_v34 = vpop.f32.mrb[78].mxu1 }
 0x9c8   : > { %2924 = vst [vmem:[%s433_s9 + $0x10] sm:$0xff] %v2909_v0  ;;  %v2912_v21 = vadd.f32 %v3138_v51, %v2911_v34  ;;  %v3473_v30 = vpop.f32.mrb[79].mxu1 }
 0x9ca   : > { %2925 = vst [vmem:[%s433_s9 + $0x18] sm:$0xff] %v2912_v21 }
 0x9cd   : > { %v2916_v36 = vpop.f32.mrb[80].mxu1 }
 0x9ce   : > { %v2917_v23 = vadd.f32 %v3138_v51, %v2916_v36  ;;  %v3476_v37 = vpop.f32.mrb[81].mxu1 }
 0x9cf   : > { %v2919_v39 = vpop.f32.mrb[82].mxu1 }
 0x9d0   : > { %2926 = vst [vmem:[%s433_s9 + $0x20] sm:$0xff] %v2917_v23  ;;  %v3477_v28 = vpop.f32.mrb[83].mxu1 }
 0x9d1   : > { %3833 = shalt.err (!%p3830_p0)
}
 0x9d2   : > { %s3834_s10 = scalar_lea.hbm %s4680_s28, 640  ;;  %s3838_s11 = scalar_lea.hbm %s4767_s23, 1280 }
 0x9d3   : > { %p3835_p6 = scmp.ne.s32.totalorder %s4680_s28, %s3834_s10  ;;  %p3839_p8 = scmp.lt.u32.totalorder %s4680_s28, %s4767_s23 }
 0x9d4   : > { %p3840_p3 = scmp.lt.u32.totalorder %s3838_s11, %s3834_s10  ;;  %p3842_p7 = scmp.lt.u32.totalorder %s3834_s10, %s4680_s28 }
 0x9d5   : > { %p3836_p11 = pnand %p3835_p6, %p4140_p10 }
 0x9d6   : > { %p3841_p5 = por %p3840_p3, %p3839_p8 }
 0x9d7   : > { %p3837_p4 = pneg %p3836_p11 }
 0x9d8   : > { %p3843_p12 = por %p3842_p7, %p3841_p5 }
 0x9da   : > { %p3844_p1 = pnand %p3843_p12, %p3837_p4 }
 0x9dc   : > { %3847 = shalt.err (!%p3844_p1)
}
 0x9dd   : > { %s3916_s21 = smov 128  }
 0x9de   : > { %3503 = dma.vmem_to_hbm [thread:$0]  (%p4140_p10), %s4675_s30, 640, %s4680_s28, %s2928_s19, %s3916_s21, %s3916_s21, %s3912_s18  }
 0x9df PF: > { %s4768_s17 = sld [smem:[#allocation18_spill]]  ;;  %s4769_s26 = sld [smem:[#allocation19_spill]] }
 0x9e0   : > { %p4771_p13 = scmp.ge.s32.totalorder %s3898_s16, 2 }
 0x9e5   : > { %s2956_s22 = sand.u32 1, %s4768_s17   ;;  %p4770_p2 = scmp.ne.s32.totalorder %s4769_s26, 0 }
 0x9e6   : > { %s2957_s10 = scalar_lea.sflag [#allocation5], %s2956_s22 }
 0x9e7   : > { %p3523_p9 = pnand %p4771_p13, %p4770_p2 }
 0x9e9   : > { %3881 = dma.done.wait (!%p3523_p9), %s2957_s10, 640  }
 0x9ea   : > { %3883 = vsyncadd (!%p3523_p9), %s2957_s10, 4294966656  ;;  %p25_p0 = scmp.ge.s32.totalorder %s4130_s24, 4   ;;  %s4772_s13 = smov %s3890_s14 }
 0x9eb   : > { %s4773_s14 = smov %s3894_s15  ;;  %s4774_s15 = smov %s4146_s12 }
 0x9ec   : > { %s4775_s16 = smov %s4130_s24  ;;  %27 = sbr.rel (!%p25_p0) target bundleno = 10 (0xa), region = 122 }
 0x9f3   :  { %2962 = vsyncpa [#allocation4], 1 }
 0x9f4   :  { %2964 = vsyncpa [#allocation4 + $0x1], 1 }
 0x9f5   :  { %2965 = vsyncpa [#allocation7], 1 }
 0x9f6   :  { %2967 = vsyncpa [#allocation7 + $0x1], 1 }
 0x9f7   :  { %2968 = vsyncpa [#allocation10], 1 }
 0x9f8   :  { %2969 = vsyncpa [#allocation5], 1 }
 0x9f9   :  { %2971 = vsyncpa [#allocation5 + $0x1], 1 }

</bundles_post_ra>
